<compile_context>
chip_gen: v7x
topology: tpu7x:2x2x1
jax: 0.10.0
libtpu: 0.0.40
codegen_flags: <defaults>
</compile_context>

<pallas_src>
import jax
import jax.numpy as jnp
from jax.experimental import pallas as pl
from jax.experimental.pallas import tpu as pltpu


# ---------------------------- in-kernel building blocks ----------------------------

def _geom(H, W, M):
    """Per-resolution geometry shared by all convs at that resolution.

    Returns (row, col, fwd):
      row/col : (1, M) int32 pixel coordinates of each lane (lanes >= H*W are dead),
      fwd     : (1, M) bool direction probe so shifted(v, off)[p] == v[(p+off) % M]
                regardless of the rotate convention pltpu.roll lowers to."""
    pos = jax.lax.broadcasted_iota(jnp.int32, (1, M), 1)
    if W & (W - 1) == 0:                      # power-of-two width: shift/mask on the VPU
        row = pos >> (W.bit_length() - 1)
        col = pos & (W - 1)
    else:
        row = pos // W
        col = pos - row * W
    expected = jnp.where(pos == M - 1, 0, pos + 1)
    fwd = pltpu.roll(pos, M - 1, axis=1) == expected
    return row, col, fwd


def _conv3x3_bias_relu(x, w_ref, b_ref, H, W, geom):
    """Fused 3x3 SAME conv + bias + ReLU on a channel-major, lane-flattened tile.

    x     : (Cin, M) f32.  Lane p < H*W holds pixel (p // W, p % W); lanes p >= H*W
            are dead (masking guarantees they never pollute real output lanes).
    w_ref : (Cout, 9*Cin) ref, column index k*Cin + ci with k = kh*3 + kw (OIHW taps).
    b_ref : (Cout, 1) ref.
    Returns (Cout, M) f32; dead lanes may hold garbage (callers never read them).
    """
    row, col, fwd = geom
    M = x.shape[1]

    pieces = []
    for dh in (-1, 0, 1):
        for dw in (-1, 0, 1):
            off = dh * W + dw                 # flat offset of this tap's source pixel
            valid = ((row + dh >= 0) & (row + dh < H) &
                     (col + dw >= 0) & (col + dw < W)).astype(jnp.float32)
            if off == 0:
                xs = x * valid
            else:
                a = pltpu.roll(x, (-off) % M, axis=1)
                b = pltpu.roll(x, off % M, axis=1)
                xs = jnp.where(fwd, a, b) * valid          # SAME zero padding
            pieces.append(xs)

    # Single accumulating MXU dot over the stacked taps (K = 9*Cin).
    xs_all = jnp.concatenate(pieces, axis=0)               # (9*Cin, M), sublane-aligned
    acc = jnp.dot(w_ref[...], xs_all, preferred_element_type=jnp.float32)
    return jnp.maximum(acc + b_ref[...], 0.0)              # fused bias + ReLU


def _avgpool2_matrix(H, W, m_in, m_out):
    """Constant matrix turning 2x2 average pooling into one matmul.

    Maps a channel-major flattened (C, m_in) map (real lanes: H*W) to a pooled
    (C, m_out) map whose real lanes are (H//2)*(W//2); all other entries are 0, so the
    pooled map stays lane-dense with zeroed dead lanes."""
    hp, wp = H // 2, W // 2
    t = jnp.arange(hp * wp)
    base = (2 * (t // wp)) * W + 2 * (t % wp)
    P = jnp.zeros((m_in, m_out), jnp.float32)
    for off in (0, 1, W, W + 1):
        P = P.at[base + off, t].set(0.25)
    return P


# ---------------------------- fused forward (single pallas_call) ----------------------------

@jax.jit
def _fused_forward(x_nchw, w1, b1, w2, b2, w3, b3):
    N, cin, H, W = x_nchw.shape
    assert H % 2 == 0 and W % 2 == 0
    c1, c2, c3 = w1.shape[0], w2.shape[0], w3.shape[0]
    hp, wp = H // 2, W // 2
    m1 = ((H * W + 127) // 128) * 128          # lane-dense width of the full-res maps
    m3 = ((hp * wp + 127) // 128) * 128        # lane-dense width of the pooled maps
    cin_p = ((cin + 7) // 8) * 8               # pad input channels to a sublane tile

    # channel-major, lane-flattened input (free reshape + tiny pad; no im2col blow-up)
    x_cm = x_nchw.reshape(N, cin, H * W)
    x_cm = jnp.pad(x_cm, ((0, 0), (0, cin_p - cin), (0, m1 - H * W)))

    def wmat(w, ci_pad):
        # OIHW -> (Cout, 9*Cin_pad), column index k*Cin_pad + ci with k = kh*3 + kw,
        # matching the tap/channel order of the in-kernel concatenation.
        co, ci, kh, kw = w.shape
        wpad = jnp.pad(w, ((0, 0), (0, ci_pad - ci), (0, 0), (0, 0)))
        return jnp.transpose(wpad, (0, 2, 3, 1)).reshape(co, kh * kw * ci_pad)

    w1m = wmat(w1, cin_p)
    w2m = wmat(w2, c1)
    w3m = wmat(w3, c2)
    b1c, b2c, b3c = b1.reshape(-1, 1), b2.reshape(-1, 1), b3.reshape(-1, 1)
    pmat = _avgpool2_matrix(H, W, m1, m3)

    def kernel(x_ref, w1_ref, b1_ref, w2_ref, b2_ref, p_ref, w3_ref, b3_ref,
               f1_ref, f2_ref, f3_ref):
        g_full = _geom(H, W, m1)               # shared by both full-resolution convs
        g_half = _geom(hp, wp, m3)
        x = x_ref[0]                                                     # (cin_p, m1)
        a1 = _conv3x3_bias_relu(x, w1_ref, b1_ref, H, W, g_full)         # layers 0 + 1
        f1_ref[0] = a1                                                   # tap idx 1
        a2 = _conv3x3_bias_relu(a1, w2_ref, b2_ref, H, W, g_full)        # layers 2 + 3
        f2_ref[0] = a2                                                   # tap idx 3
        p = jnp.dot(a2, p_ref[...], preferred_element_type=jnp.float32)  # layer 4 (avg pool)
        a3 = _conv3x3_bias_relu(p, w3_ref, b3_ref, hp, wp, g_half)       # layers 5 + 6
        f3_ref[0] = a3                                                   # tap idx 6

    f1, f2, f3 = pl.pallas_call(
        kernel,
        out_shape=(jax.ShapeDtypeStruct((N, c1, m1), jnp.float32),
                   jax.ShapeDtypeStruct((N, c2, m1), jnp.float32),
                   jax.ShapeDtypeStruct((N, c3, m3), jnp.float32)),
        grid=(N,),
        in_specs=[
            pl.BlockSpec((1, cin_p, m1), lambda n: (n, 0, 0)),
            pl.BlockSpec((c1, 9 * cin_p), lambda n: (0, 0)),
            pl.BlockSpec((c1, 1), lambda n: (0, 0)),
            pl.BlockSpec((c2, 9 * c1), lambda n: (0, 0)),
            pl.BlockSpec((c2, 1), lambda n: (0, 0)),
            pl.BlockSpec((m1, m3), lambda n: (0, 0)),
            pl.BlockSpec((c3, 9 * c2), lambda n: (0, 0)),
            pl.BlockSpec((c3, 1), lambda n: (0, 0)),
        ],
        out_specs=(
            pl.BlockSpec((1, c1, m1), lambda n: (n, 0, 0)),
            pl.BlockSpec((1, c2, m1), lambda n: (n, 0, 0)),
            pl.BlockSpec((1, c3, m3), lambda n: (n, 0, 0)),
        ),
        compiler_params=pltpu.CompilerParams(dimension_semantics=("parallel",)),
    )(x_cm, w1m, b1c, w2m, b2c, pmat, w3m, b3c)

    # Channel-major, lane-dense outputs: the NCHW feature taps are free reshapes
    # (plus a tiny slice dropping dead lanes of the pooled-resolution map).
    F1 = f1[:, :, : H * W].reshape(N, c1, H, W)
    F2 = f2[:, :, : H * W].reshape(N, c2, H, W)
    F3 = f3[:, :, : hp * wp].reshape(N, c3, hp, wp)
    return [F1, F2, F3]


# ---------------------------- FeatureExtractor ----------------------------

def feature_extractor(img_nchw, layers, idxs, detach=False):
    """Mirror of FeatureExtractor.forward for the synthetic net above:
    ReLU made non-inplace (irrelevant for values), MaxPool2d(k) -> AvgPool2d(k),
    break after the last tapped index; `detach` is a no-op for forward values.
    The whole tapped sub-network (layers 0..idxs[-1]) runs as ONE fused Pallas kernel
    with VMEM-resident intermediates."""
    del detach
    assert list(idxs) == [1, 3, 6], "fused kernel is specialized to taps at [1, 3, 6]"
    kinds = [l[0] for l in layers[: idxs[-1] + 1]]
    assert kinds == ["conv", "relu", "conv", "relu", "maxpool", "conv", "relu"]
    assert layers[4][1] == 2
    (_, w1, b1), (_, w2, b2), (_, w3, b3) = layers[0], layers[2], layers[5]
    return _fused_forward(img_nchw, w1, b1, w2, b2, w3, b3)


# ---------------------------- pure-JAX reference ----------------------------

def _ref_features(x, w1, b1, w2, b2, w3, b3):
    def conv(z, w, b):
        return jax.lax.conv_general_dilated(
            z, w, (1, 1), "SAME",
            dimension_numbers=("NCHW", "OIHW", "NCHW")) + b[None, :, None, None]

    a = jnp.maximum(conv(x, w1, b1), 0.0); f1 = a
    a = jnp.maximum(conv(a, w2, b2), 0.0); f2 = a
    n, c, h, w = a.shape
    a = a.reshape(n, c, h // 2, 2, w // 2, 2).mean(axis=(3, 5))   # MaxPool->AvgPool
    a = jnp.maximum(conv(a, w3, b3), 0.0); f3 = a
    return [f1, f2, f3]


# ---------------------------- main ----------------------------

if __name__ == "__main__":
    key = jax.random.PRNGKey(0)
    k_img, k1, k2, k3, k4, k5, k6 = jax.random.split(key, 7)

    # deterministic synthetic parameters (PyTorch Conv2d weight layout: OIHW)
    w1 = 0.1 * jax.random.normal(k1, (8, 4, 3, 3), jnp.float32)
    b1 = 0.05 * jax.random.normal(k2, (8,), jnp.float32)
    w2 = 0.1 * jax.random.normal(k3, (8, 8, 3, 3), jnp.float32)
    b2 = 0.05 * jax.random.normal(k4, (8,), jnp.float32)
    w3 = 0.1 * jax.random.normal(k5, (16, 8, 3, 3), jnp.float32)
    b3 = 0.05 * jax.random.normal(k6, (16,), jnp.float32)

    layers = [
        ("conv", w1, b1),   # 0
        ("relu",),          # 1  <- tap
        ("conv", w2, b2),   # 2
        ("relu",),          # 3  <- tap
        ("maxpool", 2),     # 4  (MaxPool2d -> AvgPool2d per FeatureExtractor)
        ("conv", w3, b3),   # 5
        ("relu",),          # 6  <- tap (last -> break)
    ]
    idxs = [1, 3, 6]

    x = jax.random.normal(k_img, (2, 4, 16, 16), jnp.float32)  # NCHW input

    feats = feature_extractor(x, layers, idxs)
    feats = [jax.block_until_ready(f) for f in feats]

    ref = _ref_features(x, w1, b1, w2, b2, w3, b3)
    assert len(feats) == len(ref) == 3
    expected_shapes = [(2, 8, 16, 16), (2, 8, 16, 16), (2, 16, 8, 8)]
    for f, r, s in zip(feats, ref, expected_shapes):
        assert f.shape == s, (f.shape, s)
        assert jnp.allclose(f, r, rtol=1e-4, atol=1e-4), float(jnp.max(jnp.abs(f - r)))

    print("KERNEL_OK")
</pallas_src>

<mosaic_0001>
module attributes {stable_mosaic.version = 11 : i64} {
  func.func @kernel(%arg0: i32, %arg1: memref<1x8x256xf32, #tpu.memory_space<vmem>>, %arg2: memref<8x72xf32, #tpu.memory_space<vmem>>, %arg3: memref<8x1xf32, #tpu.memory_space<vmem>>, %arg4: memref<8x72xf32, #tpu.memory_space<vmem>>, %arg5: memref<8x1xf32, #tpu.memory_space<vmem>>, %arg6: memref<256x128xf32, #tpu.memory_space<vmem>>, %arg7: memref<16x72xf32, #tpu.memory_space<vmem>>, %arg8: memref<16x1xf32, #tpu.memory_space<vmem>>, %arg9: memref<1x8x256xf32, #tpu.memory_space<vmem>>, %arg10: memref<1x8x256xf32, #tpu.memory_space<vmem>>, %arg11: memref<1x16x128xf32, #tpu.memory_space<vmem>>) attributes {dimension_semantics = [#tpu.dimension_semantics<parallel>], iteration_bounds = array<i64: 2>, scalar_prefetch = 0 : i64, scratch_operands = 0 : i64, tpu.core_type = #tpu.core_type<tc>, window_params = [{transform_indices = @transform_0, window_bounds = array<i64: 1, 8, 256>}, {pipeline_mode = #tpu.pipeline_mode<synchronous>, transform_indices = @transform_1, window_bounds = array<i64: 8, 72>}, {pipeline_mode = #tpu.pipeline_mode<synchronous>, transform_indices = @transform_2, window_bounds = array<i64: 8, 1>}, {pipeline_mode = #tpu.pipeline_mode<synchronous>, transform_indices = @transform_3, window_bounds = array<i64: 8, 72>}, {pipeline_mode = #tpu.pipeline_mode<synchronous>, transform_indices = @transform_4, window_bounds = array<i64: 8, 1>}, {pipeline_mode = #tpu.pipeline_mode<synchronous>, transform_indices = @transform_5, window_bounds = array<i64: 256, 128>}, {pipeline_mode = #tpu.pipeline_mode<synchronous>, transform_indices = @transform_6, window_bounds = array<i64: 16, 72>}, {pipeline_mode = #tpu.pipeline_mode<synchronous>, transform_indices = @transform_7, window_bounds = array<i64: 16, 1>}, {transform_indices = @transform_8, window_bounds = array<i64: 1, 8, 256>}, {transform_indices = @transform_9, window_bounds = array<i64: 1, 8, 256>}, {transform_indices = @transform_10, window_bounds = array<i64: 1, 16, 128>}]} {
    %0 = tpu.iota {dimensions = array<i32: 1>} : vector<1x256xi32>
    %c4_i32 = arith.constant 4 : i32
    %1 = vector.broadcast %c4_i32 : i32 to vector<1x256xi32>
    %2 = arith.shrsi %0, %1 : vector<1x256xi32>
    %c15_i32 = arith.constant 15 : i32
    %3 = vector.broadcast %c15_i32 : i32 to vector<1x256xi32>
    %4 = arith.andi %0, %3 : vector<1x256xi32>
    %c255_i32 = arith.constant 255 : i32
    %5 = vector.broadcast %c255_i32 : i32 to vector<1x256xi32>
    %6 = arith.cmpi eq, %0, %5 : vector<1x256xi32>
    %c1_i32 = arith.constant 1 : i32
    %7 = vector.broadcast %c1_i32 : i32 to vector<1x256xi32>
    %8 = arith.addi %0, %7 : vector<1x256xi32>
    %c0_i32 = arith.constant 0 : i32
    %9 = vector.broadcast %c0_i32 : i32 to vector<1x256xi32>
    %10 = arith.select %6, %9, %8 : vector<1x256xi1>, vector<1x256xi32>
    %c255_i32_0 = arith.constant 255 : i32
    %11 = tpu.dynamic_rotate %0 by %c255_i32_0 dim 1 : vector<1x256xi32>, i32 -> vector<1x256xi32>
    %12 = arith.cmpi eq, %11, %10 : vector<1x256xi32>
    %13 = tpu.iota {dimensions = array<i32: 1>} : vector<1x128xi32>
    %c3_i32 = arith.constant 3 : i32
    %14 = vector.broadcast %c3_i32 : i32 to vector<1x128xi32>
    %15 = arith.shrsi %13, %14 : vector<1x128xi32>
    %c7_i32 = arith.constant 7 : i32
    %16 = vector.broadcast %c7_i32 : i32 to vector<1x128xi32>
    %17 = arith.andi %13, %16 : vector<1x128xi32>
    %c127_i32 = arith.constant 127 : i32
    %18 = vector.broadcast %c127_i32 : i32 to vector<1x128xi32>
    %19 = arith.cmpi eq, %13, %18 : vector<1x128xi32>
    %c1_i32_1 = arith.constant 1 : i32
    %20 = vector.broadcast %c1_i32_1 : i32 to vector<1x128xi32>
    %21 = arith.addi %13, %20 : vector<1x128xi32>
    %c0_i32_2 = arith.constant 0 : i32
    %22 = vector.broadcast %c0_i32_2 : i32 to vector<1x128xi32>
    %23 = arith.select %19, %22, %21 : vector<1x128xi1>, vector<1x128xi32>
    %c127_i32_3 = arith.constant 127 : i32
    %24 = tpu.dynamic_rotate %13 by %c127_i32_3 dim 1 : vector<1x128xi32>, i32 -> vector<1x128xi32>
    %25 = arith.cmpi eq, %24, %23 : vector<1x128xi32>
    %c0 = arith.constant 0 : index
    %c0_4 = arith.constant 0 : index
    %c0_5 = arith.constant 0 : index
    %26 = vector.load %arg1[%c0, %c0_4, %c0_5] : memref<1x8x256xf32, #tpu.memory_space<vmem>>, vector<1x8x256xf32>
    %27 = vector.shape_cast %26 : vector<1x8x256xf32> to vector<8x256xf32>
    %c-1_i32 = arith.constant -1 : i32
    %28 = vector.broadcast %c-1_i32 : i32 to vector<1x256xi32>
    %29 = arith.addi %2, %28 : vector<1x256xi32>
    %c0_i32_6 = arith.constant 0 : i32
    %30 = vector.broadcast %c0_i32_6 : i32 to vector<1x256xi32>
    %31 = arith.cmpi sge, %29, %30 : vector<1x256xi32>
    %c-1_i32_7 = arith.constant -1 : i32
    %32 = vector.broadcast %c-1_i32_7 : i32 to vector<1x256xi32>
    %33 = arith.addi %2, %32 : vector<1x256xi32>
    %c16_i32 = arith.constant 16 : i32
    %34 = vector.broadcast %c16_i32 : i32 to vector<1x256xi32>
    %35 = arith.cmpi slt, %33, %34 : vector<1x256xi32>
    %36 = arith.andi %31, %35 : vector<1x256xi1>
    %c-1_i32_8 = arith.constant -1 : i32
    %37 = vector.broadcast %c-1_i32_8 : i32 to vector<1x256xi32>
    %38 = arith.addi %4, %37 : vector<1x256xi32>
    %c0_i32_9 = arith.constant 0 : i32
    %39 = vector.broadcast %c0_i32_9 : i32 to vector<1x256xi32>
    %40 = arith.cmpi sge, %38, %39 : vector<1x256xi32>
    %41 = arith.andi %36, %40 : vector<1x256xi1>
    %c-1_i32_10 = arith.constant -1 : i32
    %42 = vector.broadcast %c-1_i32_10 : i32 to vector<1x256xi32>
    %43 = arith.addi %4, %42 : vector<1x256xi32>
    %c16_i32_11 = arith.constant 16 : i32
    %44 = vector.broadcast %c16_i32_11 : i32 to vector<1x256xi32>
    %45 = arith.cmpi slt, %43, %44 : vector<1x256xi32>
    %46 = arith.andi %41, %45 : vector<1x256xi1>
    %47 = arith.extui %46 : vector<1x256xi1> to vector<1x256xi32>
    %48 = arith.sitofp %47 : vector<1x256xi32> to vector<1x256xf32>
    %c17_i32 = arith.constant 17 : i32
    %49 = tpu.dynamic_rotate %27 by %c17_i32 dim 1 : vector<8x256xf32>, i32 -> vector<8x256xf32>
    %c239_i32 = arith.constant 239 : i32
    %50 = tpu.dynamic_rotate %27 by %c239_i32 dim 1 : vector<8x256xf32>, i32 -> vector<8x256xf32>
    %51 = vector.shape_cast %12 : vector<1x256xi1> to vector<1x256xi1>
    %52 = vector.broadcast %51 : vector<1x256xi1> to vector<8x256xi1>
    %53 = arith.select %52, %49, %50 : vector<8x256xi1>, vector<8x256xf32>
    %54 = vector.broadcast %48 : vector<1x256xf32> to vector<8x256xf32>
    %55 = arith.mulf %53, %54 : vector<8x256xf32>
    %c-1_i32_12 = arith.constant -1 : i32
    %56 = vector.broadcast %c-1_i32_12 : i32 to vector<1x256xi32>
    %57 = arith.addi %2, %56 : vector<1x256xi32>
    %c0_i32_13 = arith.constant 0 : i32
    %58 = vector.broadcast %c0_i32_13 : i32 to vector<1x256xi32>
    %59 = arith.cmpi sge, %57, %58 : vector<1x256xi32>
    %c-1_i32_14 = arith.constant -1 : i32
    %60 = vector.broadcast %c-1_i32_14 : i32 to vector<1x256xi32>
    %61 = arith.addi %2, %60 : vector<1x256xi32>
    %c16_i32_15 = arith.constant 16 : i32
    %62 = vector.broadcast %c16_i32_15 : i32 to vector<1x256xi32>
    %63 = arith.cmpi slt, %61, %62 : vector<1x256xi32>
    %64 = arith.andi %59, %63 : vector<1x256xi1>
    %c0_i32_16 = arith.constant 0 : i32
    %65 = vector.broadcast %c0_i32_16 : i32 to vector<1x256xi32>
    %66 = arith.addi %4, %65 : vector<1x256xi32>
    %c0_i32_17 = arith.constant 0 : i32
    %67 = vector.broadcast %c0_i32_17 : i32 to vector<1x256xi32>
    %68 = arith.cmpi sge, %66, %67 : vector<1x256xi32>
    %69 = arith.andi %64, %68 : vector<1x256xi1>
    %c0_i32_18 = arith.constant 0 : i32
    %70 = vector.broadcast %c0_i32_18 : i32 to vector<1x256xi32>
    %71 = arith.addi %4, %70 : vector<1x256xi32>
    %c16_i32_19 = arith.constant 16 : i32
    %72 = vector.broadcast %c16_i32_19 : i32 to vector<1x256xi32>
    %73 = arith.cmpi slt, %71, %72 : vector<1x256xi32>
    %74 = arith.andi %69, %73 : vector<1x256xi1>
    %75 = arith.extui %74 : vector<1x256xi1> to vector<1x256xi32>
    %76 = arith.sitofp %75 : vector<1x256xi32> to vector<1x256xf32>
    %c16_i32_20 = arith.constant 16 : i32
    %77 = tpu.dynamic_rotate %27 by %c16_i32_20 dim 1 : vector<8x256xf32>, i32 -> vector<8x256xf32>
    %c240_i32 = arith.constant 240 : i32
    %78 = tpu.dynamic_rotate %27 by %c240_i32 dim 1 : vector<8x256xf32>, i32 -> vector<8x256xf32>
    %79 = vector.shape_cast %12 : vector<1x256xi1> to vector<1x256xi1>
    %80 = vector.broadcast %79 : vector<1x256xi1> to vector<8x256xi1>
    %81 = arith.select %80, %77, %78 : vector<8x256xi1>, vector<8x256xf32>
    %82 = vector.broadcast %76 : vector<1x256xf32> to vector<8x256xf32>
    %83 = arith.mulf %81, %82 : vector<8x256xf32>
    %c-1_i32_21 = arith.constant -1 : i32
    %84 = vector.broadcast %c-1_i32_21 : i32 to vector<1x256xi32>
    %85 = arith.addi %2, %84 : vector<1x256xi32>
    %c0_i32_22 = arith.constant 0 : i32
    %86 = vector.broadcast %c0_i32_22 : i32 to vector<1x256xi32>
    %87 = arith.cmpi sge, %85, %86 : vector<1x256xi32>
    %c-1_i32_23 = arith.constant -1 : i32
    %88 = vector.broadcast %c-1_i32_23 : i32 to vector<1x256xi32>
    %89 = arith.addi %2, %88 : vector<1x256xi32>
    %c16_i32_24 = arith.constant 16 : i32
    %90 = vector.broadcast %c16_i32_24 : i32 to vector<1x256xi32>
    %91 = arith.cmpi slt, %89, %90 : vector<1x256xi32>
    %92 = arith.andi %87, %91 : vector<1x256xi1>
    %c1_i32_25 = arith.constant 1 : i32
    %93 = vector.broadcast %c1_i32_25 : i32 to vector<1x256xi32>
    %94 = arith.addi %4, %93 : vector<1x256xi32>
    %c0_i32_26 = arith.constant 0 : i32
    %95 = vector.broadcast %c0_i32_26 : i32 to vector<1x256xi32>
    %96 = arith.cmpi sge, %94, %95 : vector<1x256xi32>
    %97 = arith.andi %92, %96 : vector<1x256xi1>
    %c1_i32_27 = arith.constant 1 : i32
    %98 = vector.broadcast %c1_i32_27 : i32 to vector<1x256xi32>
    %99 = arith.addi %4, %98 : vector<1x256xi32>
    %c16_i32_28 = arith.constant 16 : i32
    %100 = vector.broadcast %c16_i32_28 : i32 to vector<1x256xi32>
    %101 = arith.cmpi slt, %99, %100 : vector<1x256xi32>
    %102 = arith.andi %97, %101 : vector<1x256xi1>
    %103 = arith.extui %102 : vector<1x256xi1> to vector<1x256xi32>
    %104 = arith.sitofp %103 : vector<1x256xi32> to vector<1x256xf32>
    %c15_i32_29 = arith.constant 15 : i32
    %105 = tpu.dynamic_rotate %27 by %c15_i32_29 dim 1 : vector<8x256xf32>, i32 -> vector<8x256xf32>
    %c241_i32 = arith.constant 241 : i32
    %106 = tpu.dynamic_rotate %27 by %c241_i32 dim 1 : vector<8x256xf32>, i32 -> vector<8x256xf32>
    %107 = vector.shape_cast %12 : vector<1x256xi1> to vector<1x256xi1>
    %108 = vector.broadcast %107 : vector<1x256xi1> to vector<8x256xi1>
    %109 = arith.select %108, %105, %106 : vector<8x256xi1>, vector<8x256xf32>
    %110 = vector.broadcast %104 : vector<1x256xf32> to vector<8x256xf32>
    %111 = arith.mulf %109, %110 : vector<8x256xf32>
    %c0_i32_30 = arith.constant 0 : i32
    %112 = vector.broadcast %c0_i32_30 : i32 to vector<1x256xi32>
    %113 = arith.addi %2, %112 : vector<1x256xi32>
    %c0_i32_31 = arith.constant 0 : i32
    %114 = vector.broadcast %c0_i32_31 : i32 to vector<1x256xi32>
    %115 = arith.cmpi sge, %113, %114 : vector<1x256xi32>
    %c0_i32_32 = arith.constant 0 : i32
    %116 = vector.broadcast %c0_i32_32 : i32 to vector<1x256xi32>
    %117 = arith.addi %2, %116 : vector<1x256xi32>
    %c16_i32_33 = arith.constant 16 : i32
    %118 = vector.broadcast %c16_i32_33 : i32 to vector<1x256xi32>
    %119 = arith.cmpi slt, %117, %118 : vector<1x256xi32>
    %120 = arith.andi %115, %119 : vector<1x256xi1>
    %c-1_i32_34 = arith.constant -1 : i32
    %121 = vector.broadcast %c-1_i32_34 : i32 to vector<1x256xi32>
    %122 = arith.addi %4, %121 : vector<1x256xi32>
    %c0_i32_35 = arith.constant 0 : i32
    %123 = vector.broadcast %c0_i32_35 : i32 to vector<1x256xi32>
    %124 = arith.cmpi sge, %122, %123 : vector<1x256xi32>
    %125 = arith.andi %120, %124 : vector<1x256xi1>
    %c-1_i32_36 = arith.constant -1 : i32
    %126 = vector.broadcast %c-1_i32_36 : i32 to vector<1x256xi32>
    %127 = arith.addi %4, %126 : vector<1x256xi32>
    %c16_i32_37 = arith.constant 16 : i32
    %128 = vector.broadcast %c16_i32_37 : i32 to vector<1x256xi32>
    %129 = arith.cmpi slt, %127, %128 : vector<1x256xi32>
    %130 = arith.andi %125, %129 : vector<1x256xi1>
    %131 = arith.extui %130 : vector<1x256xi1> to vector<1x256xi32>
    %132 = arith.sitofp %131 : vector<1x256xi32> to vector<1x256xf32>
    %c1_i32_38 = arith.constant 1 : i32
    %133 = tpu.dynamic_rotate %27 by %c1_i32_38 dim 1 : vector<8x256xf32>, i32 -> vector<8x256xf32>
    %c255_i32_39 = arith.constant 255 : i32
    %134 = tpu.dynamic_rotate %27 by %c255_i32_39 dim 1 : vector<8x256xf32>, i32 -> vector<8x256xf32>
    %135 = vector.shape_cast %12 : vector<1x256xi1> to vector<1x256xi1>
    %136 = vector.broadcast %135 : vector<1x256xi1> to vector<8x256xi1>
    %137 = arith.select %136, %133, %134 : vector<8x256xi1>, vector<8x256xf32>
    %138 = vector.broadcast %132 : vector<1x256xf32> to vector<8x256xf32>
    %139 = arith.mulf %137, %138 : vector<8x256xf32>
    %c0_i32_40 = arith.constant 0 : i32
    %140 = vector.broadcast %c0_i32_40 : i32 to vector<1x256xi32>
    %141 = arith.addi %2, %140 : vector<1x256xi32>
    %c0_i32_41 = arith.constant 0 : i32
    %142 = vector.broadcast %c0_i32_41 : i32 to vector<1x256xi32>
    %143 = arith.cmpi sge, %141, %142 : vector<1x256xi32>
    %c0_i32_42 = arith.constant 0 : i32
    %144 = vector.broadcast %c0_i32_42 : i32 to vector<1x256xi32>
    %145 = arith.addi %2, %144 : vector<1x256xi32>
    %c16_i32_43 = arith.constant 16 : i32
    %146 = vector.broadcast %c16_i32_43 : i32 to vector<1x256xi32>
    %147 = arith.cmpi slt, %145, %146 : vector<1x256xi32>
    %148 = arith.andi %143, %147 : vector<1x256xi1>
    %c0_i32_44 = arith.constant 0 : i32
    %149 = vector.broadcast %c0_i32_44 : i32 to vector<1x256xi32>
    %150 = arith.addi %4, %149 : vector<1x256xi32>
    %c0_i32_45 = arith.constant 0 : i32
    %151 = vector.broadcast %c0_i32_45 : i32 to vector<1x256xi32>
    %152 = arith.cmpi sge, %150, %151 : vector<1x256xi32>
    %153 = arith.andi %148, %152 : vector<1x256xi1>
    %c0_i32_46 = arith.constant 0 : i32
    %154 = vector.broadcast %c0_i32_46 : i32 to vector<1x256xi32>
    %155 = arith.addi %4, %154 : vector<1x256xi32>
    %c16_i32_47 = arith.constant 16 : i32
    %156 = vector.broadcast %c16_i32_47 : i32 to vector<1x256xi32>
    %157 = arith.cmpi slt, %155, %156 : vector<1x256xi32>
    %158 = arith.andi %153, %157 : vector<1x256xi1>
    %159 = arith.extui %158 : vector<1x256xi1> to vector<1x256xi32>
    %160 = arith.sitofp %159 : vector<1x256xi32> to vector<1x256xf32>
    %161 = vector.broadcast %160 : vector<1x256xf32> to vector<8x256xf32>
    %162 = arith.mulf %27, %161 : vector<8x256xf32>
    %c0_i32_48 = arith.constant 0 : i32
    %163 = vector.broadcast %c0_i32_48 : i32 to vector<1x256xi32>
    %164 = arith.addi %2, %163 : vector<1x256xi32>
    %c0_i32_49 = arith.constant 0 : i32
    %165 = vector.broadcast %c0_i32_49 : i32 to vector<1x256xi32>
    %166 = arith.cmpi sge, %164, %165 : vector<1x256xi32>
    %c0_i32_50 = arith.constant 0 : i32
    %167 = vector.broadcast %c0_i32_50 : i32 to vector<1x256xi32>
    %168 = arith.addi %2, %167 : vector<1x256xi32>
    %c16_i32_51 = arith.constant 16 : i32
    %169 = vector.broadcast %c16_i32_51 : i32 to vector<1x256xi32>
    %170 = arith.cmpi slt, %168, %169 : vector<1x256xi32>
    %171 = arith.andi %166, %170 : vector<1x256xi1>
    %c1_i32_52 = arith.constant 1 : i32
    %172 = vector.broadcast %c1_i32_52 : i32 to vector<1x256xi32>
    %173 = arith.addi %4, %172 : vector<1x256xi32>
    %c0_i32_53 = arith.constant 0 : i32
    %174 = vector.broadcast %c0_i32_53 : i32 to vector<1x256xi32>
    %175 = arith.cmpi sge, %173, %174 : vector<1x256xi32>
    %176 = arith.andi %171, %175 : vector<1x256xi1>
    %c1_i32_54 = arith.constant 1 : i32
    %177 = vector.broadcast %c1_i32_54 : i32 to vector<1x256xi32>
    %178 = arith.addi %4, %177 : vector<1x256xi32>
    %c16_i32_55 = arith.constant 16 : i32
    %179 = vector.broadcast %c16_i32_55 : i32 to vector<1x256xi32>
    %180 = arith.cmpi slt, %178, %179 : vector<1x256xi32>
    %181 = arith.andi %176, %180 : vector<1x256xi1>
    %182 = arith.extui %181 : vector<1x256xi1> to vector<1x256xi32>
    %183 = arith.sitofp %182 : vector<1x256xi32> to vector<1x256xf32>
    %c255_i32_56 = arith.constant 255 : i32
    %184 = tpu.dynamic_rotate %27 by %c255_i32_56 dim 1 : vector<8x256xf32>, i32 -> vector<8x256xf32>
    %c1_i32_57 = arith.constant 1 : i32
    %185 = tpu.dynamic_rotate %27 by %c1_i32_57 dim 1 : vector<8x256xf32>, i32 -> vector<8x256xf32>
    %186 = vector.shape_cast %12 : vector<1x256xi1> to vector<1x256xi1>
    %187 = vector.broadcast %186 : vector<1x256xi1> to vector<8x256xi1>
    %188 = arith.select %187, %184, %185 : vector<8x256xi1>, vector<8x256xf32>
    %189 = vector.broadcast %183 : vector<1x256xf32> to vector<8x256xf32>
    %190 = arith.mulf %188, %189 : vector<8x256xf32>
    %c1_i32_58 = arith.constant 1 : i32
    %191 = vector.broadcast %c1_i32_58 : i32 to vector<1x256xi32>
    %192 = arith.addi %2, %191 : vector<1x256xi32>
    %c0_i32_59 = arith.constant 0 : i32
    %193 = vector.broadcast %c0_i32_59 : i32 to vector<1x256xi32>
    %194 = arith.cmpi sge, %192, %193 : vector<1x256xi32>
    %c1_i32_60 = arith.constant 1 : i32
    %195 = vector.broadcast %c1_i32_60 : i32 to vector<1x256xi32>
    %196 = arith.addi %2, %195 : vector<1x256xi32>
    %c16_i32_61 = arith.constant 16 : i32
    %197 = vector.broadcast %c16_i32_61 : i32 to vector<1x256xi32>
    %198 = arith.cmpi slt, %196, %197 : vector<1x256xi32>
    %199 = arith.andi %194, %198 : vector<1x256xi1>
    %c-1_i32_62 = arith.constant -1 : i32
    %200 = vector.broadcast %c-1_i32_62 : i32 to vector<1x256xi32>
    %201 = arith.addi %4, %200 : vector<1x256xi32>
    %c0_i32_63 = arith.constant 0 : i32
    %202 = vector.broadcast %c0_i32_63 : i32 to vector<1x256xi32>
    %203 = arith.cmpi sge, %201, %202 : vector<1x256xi32>
    %204 = arith.andi %199, %203 : vector<1x256xi1>
    %c-1_i32_64 = arith.constant -1 : i32
    %205 = vector.broadcast %c-1_i32_64 : i32 to vector<1x256xi32>
    %206 = arith.addi %4, %205 : vector<1x256xi32>
    %c16_i32_65 = arith.constant 16 : i32
    %207 = vector.broadcast %c16_i32_65 : i32 to vector<1x256xi32>
    %208 = arith.cmpi slt, %206, %207 : vector<1x256xi32>
    %209 = arith.andi %204, %208 : vector<1x256xi1>
    %210 = arith.extui %209 : vector<1x256xi1> to vector<1x256xi32>
    %211 = arith.sitofp %210 : vector<1x256xi32> to vector<1x256xf32>
    %c241_i32_66 = arith.constant 241 : i32
    %212 = tpu.dynamic_rotate %27 by %c241_i32_66 dim 1 : vector<8x256xf32>, i32 -> vector<8x256xf32>
    %c15_i32_67 = arith.constant 15 : i32
    %213 = tpu.dynamic_rotate %27 by %c15_i32_67 dim 1 : vector<8x256xf32>, i32 -> vector<8x256xf32>
    %214 = vector.shape_cast %12 : vector<1x256xi1> to vector<1x256xi1>
    %215 = vector.broadcast %214 : vector<1x256xi1> to vector<8x256xi1>
    %216 = arith.select %215, %212, %213 : vector<8x256xi1>, vector<8x256xf32>
    %217 = vector.broadcast %211 : vector<1x256xf32> to vector<8x256xf32>
    %218 = arith.mulf %216, %217 : vector<8x256xf32>
    %c1_i32_68 = arith.constant 1 : i32
    %219 = vector.broadcast %c1_i32_68 : i32 to vector<1x256xi32>
    %220 = arith.addi %2, %219 : vector<1x256xi32>
    %c0_i32_69 = arith.constant 0 : i32
    %221 = vector.broadcast %c0_i32_69 : i32 to vector<1x256xi32>
    %222 = arith.cmpi sge, %220, %221 : vector<1x256xi32>
    %c1_i32_70 = arith.constant 1 : i32
    %223 = vector.broadcast %c1_i32_70 : i32 to vector<1x256xi32>
    %224 = arith.addi %2, %223 : vector<1x256xi32>
    %c16_i32_71 = arith.constant 16 : i32
    %225 = vector.broadcast %c16_i32_71 : i32 to vector<1x256xi32>
    %226 = arith.cmpi slt, %224, %225 : vector<1x256xi32>
    %227 = arith.andi %222, %226 : vector<1x256xi1>
    %c0_i32_72 = arith.constant 0 : i32
    %228 = vector.broadcast %c0_i32_72 : i32 to vector<1x256xi32>
    %229 = arith.addi %4, %228 : vector<1x256xi32>
    %c0_i32_73 = arith.constant 0 : i32
    %230 = vector.broadcast %c0_i32_73 : i32 to vector<1x256xi32>
    %231 = arith.cmpi sge, %229, %230 : vector<1x256xi32>
    %232 = arith.andi %227, %231 : vector<1x256xi1>
    %c0_i32_74 = arith.constant 0 : i32
    %233 = vector.broadcast %c0_i32_74 : i32 to vector<1x256xi32>
    %234 = arith.addi %4, %233 : vector<1x256xi32>
    %c16_i32_75 = arith.constant 16 : i32
    %235 = vector.broadcast %c16_i32_75 : i32 to vector<1x256xi32>
    %236 = arith.cmpi slt, %234, %235 : vector<1x256xi32>
    %237 = arith.andi %232, %236 : vector<1x256xi1>
    %238 = arith.extui %237 : vector<1x256xi1> to vector<1x256xi32>
    %239 = arith.sitofp %238 : vector<1x256xi32> to vector<1x256xf32>
    %c240_i32_76 = arith.constant 240 : i32
    %240 = tpu.dynamic_rotate %27 by %c240_i32_76 dim 1 : vector<8x256xf32>, i32 -> vector<8x256xf32>
    %c16_i32_77 = arith.constant 16 : i32
    %241 = tpu.dynamic_rotate %27 by %c16_i32_77 dim 1 : vector<8x256xf32>, i32 -> vector<8x256xf32>
    %242 = vector.shape_cast %12 : vector<1x256xi1> to vector<1x256xi1>
    %243 = vector.broadcast %242 : vector<1x256xi1> to vector<8x256xi1>
    %244 = arith.select %243, %240, %241 : vector<8x256xi1>, vector<8x256xf32>
    %245 = vector.broadcast %239 : vector<1x256xf32> to vector<8x256xf32>
    %246 = arith.mulf %244, %245 : vector<8x256xf32>
    %c1_i32_78 = arith.constant 1 : i32
    %247 = vector.broadcast %c1_i32_78 : i32 to vector<1x256xi32>
    %248 = arith.addi %2, %247 : vector<1x256xi32>
    %c0_i32_79 = arith.constant 0 : i32
    %249 = vector.broadcast %c0_i32_79 : i32 to vector<1x256xi32>
    %250 = arith.cmpi sge, %248, %249 : vector<1x256xi32>
    %c1_i32_80 = arith.constant 1 : i32
    %251 = vector.broadcast %c1_i32_80 : i32 to vector<1x256xi32>
    %252 = arith.addi %2, %251 : vector<1x256xi32>
    %c16_i32_81 = arith.constant 16 : i32
    %253 = vector.broadcast %c16_i32_81 : i32 to vector<1x256xi32>
    %254 = arith.cmpi slt, %252, %253 : vector<1x256xi32>
    %255 = arith.andi %250, %254 : vector<1x256xi1>
    %c1_i32_82 = arith.constant 1 : i32
    %256 = vector.broadcast %c1_i32_82 : i32 to vector<1x256xi32>
    %257 = arith.addi %4, %256 : vector<1x256xi32>
    %c0_i32_83 = arith.constant 0 : i32
    %258 = vector.broadcast %c0_i32_83 : i32 to vector<1x256xi32>
    %259 = arith.cmpi sge, %257, %258 : vector<1x256xi32>
    %260 = arith.andi %255, %259 : vector<1x256xi1>
    %c1_i32_84 = arith.constant 1 : i32
    %261 = vector.broadcast %c1_i32_84 : i32 to vector<1x256xi32>
    %262 = arith.addi %4, %261 : vector<1x256xi32>
    %c16_i32_85 = arith.constant 16 : i32
    %263 = vector.broadcast %c16_i32_85 : i32 to vector<1x256xi32>
    %264 = arith.cmpi slt, %262, %263 : vector<1x256xi32>
    %265 = arith.andi %260, %264 : vector<1x256xi1>
    %266 = arith.extui %265 : vector<1x256xi1> to vector<1x256xi32>
    %267 = arith.sitofp %266 : vector<1x256xi32> to vector<1x256xf32>
    %c239_i32_86 = arith.constant 239 : i32
    %268 = tpu.dynamic_rotate %27 by %c239_i32_86 dim 1 : vector<8x256xf32>, i32 -> vector<8x256xf32>
    %c17_i32_87 = arith.constant 17 : i32
    %269 = tpu.dynamic_rotate %27 by %c17_i32_87 dim 1 : vector<8x256xf32>, i32 -> vector<8x256xf32>
    %270 = vector.shape_cast %12 : vector<1x256xi1> to vector<1x256xi1>
    %271 = vector.broadcast %270 : vector<1x256xi1> to vector<8x256xi1>
    %272 = arith.select %271, %268, %269 : vector<8x256xi1>, vector<8x256xf32>
    %273 = vector.broadcast %267 : vector<1x256xf32> to vector<8x256xf32>
    %274 = arith.mulf %272, %273 : vector<8x256xf32>
    %275 = tpu.concatenate %55, %83, %111, %139, %162, %190, %218, %246, %274 in 0 : vector<8x256xf32>, vector<8x256xf32>, vector<8x256xf32>, vector<8x256xf32>, vector<8x256xf32>, vector<8x256xf32>, vector<8x256xf32>, vector<8x256xf32>, vector<8x256xf32> -> vector<72x256xf32>
    %c0_88 = arith.constant 0 : index
    %c0_89 = arith.constant 0 : index
    %276 = vector.load %arg2[%c0_88, %c0_89] : memref<8x72xf32, #tpu.memory_space<vmem>>, vector<8x72xf32>
    %cst = arith.constant dense<0.000000e+00> : vector<8x256xf32>
    %277 = tpu.matmul %276, %275, %cst {dimension_numbers = #tpu.dot_dimension_numbers<[1], [0], [0], [1], [0, 0, 1, 1], [], []>} : vector<8x72xf32>, vector<72x256xf32>, vector<8x256xf32> -> vector<8x256xf32>
    %c0_90 = arith.constant 0 : index
    %c0_91 = arith.constant 0 : index
    %278 = vector.load %arg3[%c0_90, %c0_91] : memref<8x1xf32, #tpu.memory_space<vmem>>, vector<8x1xf32>
    %279 = vector.broadcast %278 : vector<8x1xf32> to vector<8x256xf32>
    %280 = arith.addf %277, %279 : vector<8x256xf32>
    %cst_92 = arith.constant 0.000000e+00 : f32
    %281 = vector.broadcast %cst_92 : f32 to vector<8x256xf32>
    %282 = arith.maximumf %280, %281 : vector<8x256xf32>
    %c0_93 = arith.constant 0 : index
    %c0_94 = arith.constant 0 : index
    %c0_95 = arith.constant 0 : index
    %283 = vector.load %arg9[%c0_93, %c0_94, %c0_95] : memref<1x8x256xf32, #tpu.memory_space<vmem>>, vector<1x8x256xf32>
    %284 = vector.shape_cast %283 : vector<1x8x256xf32> to vector<8x256xf32>
    %285 = vector.shape_cast %282 : vector<8x256xf32> to vector<1x8x256xf32>
    tpu.vector_store %arg9[%c0_93, %c0_94, %c0_95], %285 {strides = array<i32>} : memref<1x8x256xf32, #tpu.memory_space<vmem>>, vector<1x8x256xf32>,
    %c-1_i32_96 = arith.constant -1 : i32
    %286 = vector.broadcast %c-1_i32_96 : i32 to vector<1x256xi32>
    %287 = arith.addi %2, %286 : vector<1x256xi32>
    %c0_i32_97 = arith.constant 0 : i32
    %288 = vector.broadcast %c0_i32_97 : i32 to vector<1x256xi32>
    %289 = arith.cmpi sge, %287, %288 : vector<1x256xi32>
    %c-1_i32_98 = arith.constant -1 : i32
    %290 = vector.broadcast %c-1_i32_98 : i32 to vector<1x256xi32>
    %291 = arith.addi %2, %290 : vector<1x256xi32>
    %c16_i32_99 = arith.constant 16 : i32
    %292 = vector.broadcast %c16_i32_99 : i32 to vector<1x256xi32>
    %293 = arith.cmpi slt, %291, %292 : vector<1x256xi32>
    %294 = arith.andi %289, %293 : vector<1x256xi1>
    %c-1_i32_100 = arith.constant -1 : i32
    %295 = vector.broadcast %c-1_i32_100 : i32 to vector<1x256xi32>
    %296 = arith.addi %4, %295 : vector<1x256xi32>
    %c0_i32_101 = arith.constant 0 : i32
    %297 = vector.broadcast %c0_i32_101 : i32 to vector<1x256xi32>
    %298 = arith.cmpi sge, %296, %297 : vector<1x256xi32>
    %299 = arith.andi %294, %298 : vector<1x256xi1>
    %c-1_i32_102 = arith.constant -1 : i32
    %300 = vector.broadcast %c-1_i32_102 : i32 to vector<1x256xi32>
    %301 = arith.addi %4, %300 : vector<1x256xi32>
    %c16_i32_103 = arith.constant 16 : i32
    %302 = vector.broadcast %c16_i32_103 : i32 to vector<1x256xi32>
    %303 = arith.cmpi slt, %301, %302 : vector<1x256xi32>
    %304 = arith.andi %299, %303 : vector<1x256xi1>
    %305 = arith.extui %304 : vector<1x256xi1> to vector<1x256xi32>
    %306 = arith.sitofp %305 : vector<1x256xi32> to vector<1x256xf32>
    %c17_i32_104 = arith.constant 17 : i32
    %307 = tpu.dynamic_rotate %282 by %c17_i32_104 dim 1 : vector<8x256xf32>, i32 -> vector<8x256xf32>
    %c239_i32_105 = arith.constant 239 : i32
    %308 = tpu.dynamic_rotate %282 by %c239_i32_105 dim 1 : vector<8x256xf32>, i32 -> vector<8x256xf32>
    %309 = vector.shape_cast %12 : vector<1x256xi1> to vector<1x256xi1>
    %310 = vector.broadcast %309 : vector<1x256xi1> to vector<8x256xi1>
    %311 = arith.select %310, %307, %308 : vector<8x256xi1>, vector<8x256xf32>
    %312 = vector.broadcast %306 : vector<1x256xf32> to vector<8x256xf32>
    %313 = arith.mulf %311, %312 : vector<8x256xf32>
    %c-1_i32_106 = arith.constant -1 : i32
    %314 = vector.broadcast %c-1_i32_106 : i32 to vector<1x256xi32>
    %315 = arith.addi %2, %314 : vector<1x256xi32>
    %c0_i32_107 = arith.constant 0 : i32
    %316 = vector.broadcast %c0_i32_107 : i32 to vector<1x256xi32>
    %317 = arith.cmpi sge, %315, %316 : vector<1x256xi32>
    %c-1_i32_108 = arith.constant -1 : i32
    %318 = vector.broadcast %c-1_i32_108 : i32 to vector<1x256xi32>
    %319 = arith.addi %2, %318 : vector<1x256xi32>
    %c16_i32_109 = arith.constant 16 : i32
    %320 = vector.broadcast %c16_i32_109 : i32 to vector<1x256xi32>
    %321 = arith.cmpi slt, %319, %320 : vector<1x256xi32>
    %322 = arith.andi %317, %321 : vector<1x256xi1>
    %c0_i32_110 = arith.constant 0 : i32
    %323 = vector.broadcast %c0_i32_110 : i32 to vector<1x256xi32>
    %324 = arith.addi %4, %323 : vector<1x256xi32>
    %c0_i32_111 = arith.constant 0 : i32
    %325 = vector.broadcast %c0_i32_111 : i32 to vector<1x256xi32>
    %326 = arith.cmpi sge, %324, %325 : vector<1x256xi32>
    %327 = arith.andi %322, %326 : vector<1x256xi1>
    %c0_i32_112 = arith.constant 0 : i32
    %328 = vector.broadcast %c0_i32_112 : i32 to vector<1x256xi32>
    %329 = arith.addi %4, %328 : vector<1x256xi32>
    %c16_i32_113 = arith.constant 16 : i32
    %330 = vector.broadcast %c16_i32_113 : i32 to vector<1x256xi32>
    %331 = arith.cmpi slt, %329, %330 : vector<1x256xi32>
    %332 = arith.andi %327, %331 : vector<1x256xi1>
    %333 = arith.extui %332 : vector<1x256xi1> to vector<1x256xi32>
    %334 = arith.sitofp %333 : vector<1x256xi32> to vector<1x256xf32>
    %c16_i32_114 = arith.constant 16 : i32
    %335 = tpu.dynamic_rotate %282 by %c16_i32_114 dim 1 : vector<8x256xf32>, i32 -> vector<8x256xf32>
    %c240_i32_115 = arith.constant 240 : i32
    %336 = tpu.dynamic_rotate %282 by %c240_i32_115 dim 1 : vector<8x256xf32>, i32 -> vector<8x256xf32>
    %337 = vector.shape_cast %12 : vector<1x256xi1> to vector<1x256xi1>
    %338 = vector.broadcast %337 : vector<1x256xi1> to vector<8x256xi1>
    %339 = arith.select %338, %335, %336 : vector<8x256xi1>, vector<8x256xf32>
    %340 = vector.broadcast %334 : vector<1x256xf32> to vector<8x256xf32>
    %341 = arith.mulf %339, %340 : vector<8x256xf32>
    %c-1_i32_116 = arith.constant -1 : i32
    %342 = vector.broadcast %c-1_i32_116 : i32 to vector<1x256xi32>
    %343 = arith.addi %2, %342 : vector<1x256xi32>
    %c0_i32_117 = arith.constant 0 : i32
    %344 = vector.broadcast %c0_i32_117 : i32 to vector<1x256xi32>
    %345 = arith.cmpi sge, %343, %344 : vector<1x256xi32>
    %c-1_i32_118 = arith.constant -1 : i32
    %346 = vector.broadcast %c-1_i32_118 : i32 to vector<1x256xi32>
    %347 = arith.addi %2, %346 : vector<1x256xi32>
    %c16_i32_119 = arith.constant 16 : i32
    %348 = vector.broadcast %c16_i32_119 : i32 to vector<1x256xi32>
    %349 = arith.cmpi slt, %347, %348 : vector<1x256xi32>
    %350 = arith.andi %345, %349 : vector<1x256xi1>
    %c1_i32_120 = arith.constant 1 : i32
    %351 = vector.broadcast %c1_i32_120 : i32 to vector<1x256xi32>
    %352 = arith.addi %4, %351 : vector<1x256xi32>
    %c0_i32_121 = arith.constant 0 : i32
    %353 = vector.broadcast %c0_i32_121 : i32 to vector<1x256xi32>
    %354 = arith.cmpi sge, %352, %353 : vector<1x256xi32>
    %355 = arith.andi %350, %354 : vector<1x256xi1>
    %c1_i32_122 = arith.constant 1 : i32
    %356 = vector.broadcast %c1_i32_122 : i32 to vector<1x256xi32>
    %357 = arith.addi %4, %356 : vector<1x256xi32>
    %c16_i32_123 = arith.constant 16 : i32
    %358 = vector.broadcast %c16_i32_123 : i32 to vector<1x256xi32>
    %359 = arith.cmpi slt, %357, %358 : vector<1x256xi32>
    %360 = arith.andi %355, %359 : vector<1x256xi1>
    %361 = arith.extui %360 : vector<1x256xi1> to vector<1x256xi32>
    %362 = arith.sitofp %361 : vector<1x256xi32> to vector<1x256xf32>
    %c15_i32_124 = arith.constant 15 : i32
    %363 = tpu.dynamic_rotate %282 by %c15_i32_124 dim 1 : vector<8x256xf32>, i32 -> vector<8x256xf32>
    %c241_i32_125 = arith.constant 241 : i32
    %364 = tpu.dynamic_rotate %282 by %c241_i32_125 dim 1 : vector<8x256xf32>, i32 -> vector<8x256xf32>
    %365 = vector.shape_cast %12 : vector<1x256xi1> to vector<1x256xi1>
    %366 = vector.broadcast %365 : vector<1x256xi1> to vector<8x256xi1>
    %367 = arith.select %366, %363, %364 : vector<8x256xi1>, vector<8x256xf32>
    %368 = vector.broadcast %362 : vector<1x256xf32> to vector<8x256xf32>
    %369 = arith.mulf %367, %368 : vector<8x256xf32>
    %c0_i32_126 = arith.constant 0 : i32
    %370 = vector.broadcast %c0_i32_126 : i32 to vector<1x256xi32>
    %371 = arith.addi %2, %370 : vector<1x256xi32>
    %c0_i32_127 = arith.constant 0 : i32
    %372 = vector.broadcast %c0_i32_127 : i32 to vector<1x256xi32>
    %373 = arith.cmpi sge, %371, %372 : vector<1x256xi32>
    %c0_i32_128 = arith.constant 0 : i32
    %374 = vector.broadcast %c0_i32_128 : i32 to vector<1x256xi32>
    %375 = arith.addi %2, %374 : vector<1x256xi32>
    %c16_i32_129 = arith.constant 16 : i32
    %376 = vector.broadcast %c16_i32_129 : i32 to vector<1x256xi32>
    %377 = arith.cmpi slt, %375, %376 : vector<1x256xi32>
    %378 = arith.andi %373, %377 : vector<1x256xi1>
    %c-1_i32_130 = arith.constant -1 : i32
    %379 = vector.broadcast %c-1_i32_130 : i32 to vector<1x256xi32>
    %380 = arith.addi %4, %379 : vector<1x256xi32>
    %c0_i32_131 = arith.constant 0 : i32
    %381 = vector.broadcast %c0_i32_131 : i32 to vector<1x256xi32>
    %382 = arith.cmpi sge, %380, %381 : vector<1x256xi32>
    %383 = arith.andi %378, %382 : vector<1x256xi1>
    %c-1_i32_132 = arith.constant -1 : i32
    %384 = vector.broadcast %c-1_i32_132 : i32 to vector<1x256xi32>
    %385 = arith.addi %4, %384 : vector<1x256xi32>
    %c16_i32_133 = arith.constant 16 : i32
    %386 = vector.broadcast %c16_i32_133 : i32 to vector<1x256xi32>
    %387 = arith.cmpi slt, %385, %386 : vector<1x256xi32>
    %388 = arith.andi %383, %387 : vector<1x256xi1>
    %389 = arith.extui %388 : vector<1x256xi1> to vector<1x256xi32>
    %390 = arith.sitofp %389 : vector<1x256xi32> to vector<1x256xf32>
    %c1_i32_134 = arith.constant 1 : i32
    %391 = tpu.dynamic_rotate %282 by %c1_i32_134 dim 1 : vector<8x256xf32>, i32 -> vector<8x256xf32>
    %c255_i32_135 = arith.constant 255 : i32
    %392 = tpu.dynamic_rotate %282 by %c255_i32_135 dim 1 : vector<8x256xf32>, i32 -> vector<8x256xf32>
    %393 = vector.shape_cast %12 : vector<1x256xi1> to vector<1x256xi1>
    %394 = vector.broadcast %393 : vector<1x256xi1> to vector<8x256xi1>
    %395 = arith.select %394, %391, %392 : vector<8x256xi1>, vector<8x256xf32>
    %396 = vector.broadcast %390 : vector<1x256xf32> to vector<8x256xf32>
    %397 = arith.mulf %395, %396 : vector<8x256xf32>
    %c0_i32_136 = arith.constant 0 : i32
    %398 = vector.broadcast %c0_i32_136 : i32 to vector<1x256xi32>
    %399 = arith.addi %2, %398 : vector<1x256xi32>
    %c0_i32_137 = arith.constant 0 : i32
    %400 = vector.broadcast %c0_i32_137 : i32 to vector<1x256xi32>
    %401 = arith.cmpi sge, %399, %400 : vector<1x256xi32>
    %c0_i32_138 = arith.constant 0 : i32
    %402 = vector.broadcast %c0_i32_138 : i32 to vector<1x256xi32>
    %403 = arith.addi %2, %402 : vector<1x256xi32>
    %c16_i32_139 = arith.constant 16 : i32
    %404 = vector.broadcast %c16_i32_139 : i32 to vector<1x256xi32>
    %405 = arith.cmpi slt, %403, %404 : vector<1x256xi32>
    %406 = arith.andi %401, %405 : vector<1x256xi1>
    %c0_i32_140 = arith.constant 0 : i32
    %407 = vector.broadcast %c0_i32_140 : i32 to vector<1x256xi32>
    %408 = arith.addi %4, %407 : vector<1x256xi32>
    %c0_i32_141 = arith.constant 0 : i32
    %409 = vector.broadcast %c0_i32_141 : i32 to vector<1x256xi32>
    %410 = arith.cmpi sge, %408, %409 : vector<1x256xi32>
    %411 = arith.andi %406, %410 : vector<1x256xi1>
    %c0_i32_142 = arith.constant 0 : i32
    %412 = vector.broadcast %c0_i32_142 : i32 to vector<1x256xi32>
    %413 = arith.addi %4, %412 : vector<1x256xi32>
    %c16_i32_143 = arith.constant 16 : i32
    %414 = vector.broadcast %c16_i32_143 : i32 to vector<1x256xi32>
    %415 = arith.cmpi slt, %413, %414 : vector<1x256xi32>
    %416 = arith.andi %411, %415 : vector<1x256xi1>
    %417 = arith.extui %416 : vector<1x256xi1> to vector<1x256xi32>
    %418 = arith.sitofp %417 : vector<1x256xi32> to vector<1x256xf32>
    %419 = vector.broadcast %418 : vector<1x256xf32> to vector<8x256xf32>
    %420 = arith.mulf %282, %419 : vector<8x256xf32>
    %c0_i32_144 = arith.constant 0 : i32
    %421 = vector.broadcast %c0_i32_144 : i32 to vector<1x256xi32>
    %422 = arith.addi %2, %421 : vector<1x256xi32>
    %c0_i32_145 = arith.constant 0 : i32
    %423 = vector.broadcast %c0_i32_145 : i32 to vector<1x256xi32>
    %424 = arith.cmpi sge, %422, %423 : vector<1x256xi32>
    %c0_i32_146 = arith.constant 0 : i32
    %425 = vector.broadcast %c0_i32_146 : i32 to vector<1x256xi32>
    %426 = arith.addi %2, %425 : vector<1x256xi32>
    %c16_i32_147 = arith.constant 16 : i32
    %427 = vector.broadcast %c16_i32_147 : i32 to vector<1x256xi32>
    %428 = arith.cmpi slt, %426, %427 : vector<1x256xi32>
    %429 = arith.andi %424, %428 : vector<1x256xi1>
    %c1_i32_148 = arith.constant 1 : i32
    %430 = vector.broadcast %c1_i32_148 : i32 to vector<1x256xi32>
    %431 = arith.addi %4, %430 : vector<1x256xi32>
    %c0_i32_149 = arith.constant 0 : i32
    %432 = vector.broadcast %c0_i32_149 : i32 to vector<1x256xi32>
    %433 = arith.cmpi sge, %431, %432 : vector<1x256xi32>
    %434 = arith.andi %429, %433 : vector<1x256xi1>
    %c1_i32_150 = arith.constant 1 : i32
    %435 = vector.broadcast %c1_i32_150 : i32 to vector<1x256xi32>
    %436 = arith.addi %4, %435 : vector<1x256xi32>
    %c16_i32_151 = arith.constant 16 : i32
    %437 = vector.broadcast %c16_i32_151 : i32 to vector<1x256xi32>
    %438 = arith.cmpi slt, %436, %437 : vector<1x256xi32>
    %439 = arith.andi %434, %438 : vector<1x256xi1>
    %440 = arith.extui %439 : vector<1x256xi1> to vector<1x256xi32>
    %441 = arith.sitofp %440 : vector<1x256xi32> to vector<1x256xf32>
    %c255_i32_152 = arith.constant 255 : i32
    %442 = tpu.dynamic_rotate %282 by %c255_i32_152 dim 1 : vector<8x256xf32>, i32 -> vector<8x256xf32>
    %c1_i32_153 = arith.constant 1 : i32
    %443 = tpu.dynamic_rotate %282 by %c1_i32_153 dim 1 : vector<8x256xf32>, i32 -> vector<8x256xf32>
    %444 = vector.shape_cast %12 : vector<1x256xi1> to vector<1x256xi1>
    %445 = vector.broadcast %444 : vector<1x256xi1> to vector<8x256xi1>
    %446 = arith.select %445, %442, %443 : vector<8x256xi1>, vector<8x256xf32>
    %447 = vector.broadcast %441 : vector<1x256xf32> to vector<8x256xf32>
    %448 = arith.mulf %446, %447 : vector<8x256xf32>
    %c1_i32_154 = arith.constant 1 : i32
    %449 = vector.broadcast %c1_i32_154 : i32 to vector<1x256xi32>
    %450 = arith.addi %2, %449 : vector<1x256xi32>
    %c0_i32_155 = arith.constant 0 : i32
    %451 = vector.broadcast %c0_i32_155 : i32 to vector<1x256xi32>
    %452 = arith.cmpi sge, %450, %451 : vector<1x256xi32>
    %c1_i32_156 = arith.constant 1 : i32
    %453 = vector.broadcast %c1_i32_156 : i32 to vector<1x256xi32>
    %454 = arith.addi %2, %453 : vector<1x256xi32>
    %c16_i32_157 = arith.constant 16 : i32
    %455 = vector.broadcast %c16_i32_157 : i32 to vector<1x256xi32>
    %456 = arith.cmpi slt, %454, %455 : vector<1x256xi32>
    %457 = arith.andi %452, %456 : vector<1x256xi1>
    %c-1_i32_158 = arith.constant -1 : i32
    %458 = vector.broadcast %c-1_i32_158 : i32 to vector<1x256xi32>
    %459 = arith.addi %4, %458 : vector<1x256xi32>
    %c0_i32_159 = arith.constant 0 : i32
    %460 = vector.broadcast %c0_i32_159 : i32 to vector<1x256xi32>
    %461 = arith.cmpi sge, %459, %460 : vector<1x256xi32>
    %462 = arith.andi %457, %461 : vector<1x256xi1>
    %c-1_i32_160 = arith.constant -1 : i32
    %463 = vector.broadcast %c-1_i32_160 : i32 to vector<1x256xi32>
    %464 = arith.addi %4, %463 : vector<1x256xi32>
    %c16_i32_161 = arith.constant 16 : i32
    %465 = vector.broadcast %c16_i32_161 : i32 to vector<1x256xi32>
    %466 = arith.cmpi slt, %464, %465 : vector<1x256xi32>
    %467 = arith.andi %462, %466 : vector<1x256xi1>
    %468 = arith.extui %467 : vector<1x256xi1> to vector<1x256xi32>
    %469 = arith.sitofp %468 : vector<1x256xi32> to vector<1x256xf32>
    %c241_i32_162 = arith.constant 241 : i32
    %470 = tpu.dynamic_rotate %282 by %c241_i32_162 dim 1 : vector<8x256xf32>, i32 -> vector<8x256xf32>
    %c15_i32_163 = arith.constant 15 : i32
    %471 = tpu.dynamic_rotate %282 by %c15_i32_163 dim 1 : vector<8x256xf32>, i32 -> vector<8x256xf32>
    %472 = vector.shape_cast %12 : vector<1x256xi1> to vector<1x256xi1>
    %473 = vector.broadcast %472 : vector<1x256xi1> to vector<8x256xi1>
    %474 = arith.select %473, %470, %471 : vector<8x256xi1>, vector<8x256xf32>
    %475 = vector.broadcast %469 : vector<1x256xf32> to vector<8x256xf32>
    %476 = arith.mulf %474, %475 : vector<8x256xf32>
    %c1_i32_164 = arith.constant 1 : i32
    %477 = vector.broadcast %c1_i32_164 : i32 to vector<1x256xi32>
    %478 = arith.addi %2, %477 : vector<1x256xi32>
    %c0_i32_165 = arith.constant 0 : i32
    %479 = vector.broadcast %c0_i32_165 : i32 to vector<1x256xi32>
    %480 = arith.cmpi sge, %478, %479 : vector<1x256xi32>
    %c1_i32_166 = arith.constant 1 : i32
    %481 = vector.broadcast %c1_i32_166 : i32 to vector<1x256xi32>
    %482 = arith.addi %2, %481 : vector<1x256xi32>
    %c16_i32_167 = arith.constant 16 : i32
    %483 = vector.broadcast %c16_i32_167 : i32 to vector<1x256xi32>
    %484 = arith.cmpi slt, %482, %483 : vector<1x256xi32>
    %485 = arith.andi %480, %484 : vector<1x256xi1>
    %c0_i32_168 = arith.constant 0 : i32
    %486 = vector.broadcast %c0_i32_168 : i32 to vector<1x256xi32>
    %487 = arith.addi %4, %486 : vector<1x256xi32>
    %c0_i32_169 = arith.constant 0 : i32
    %488 = vector.broadcast %c0_i32_169 : i32 to vector<1x256xi32>
    %489 = arith.cmpi sge, %487, %488 : vector<1x256xi32>
    %490 = arith.andi %485, %489 : vector<1x256xi1>
    %c0_i32_170 = arith.constant 0 : i32
    %491 = vector.broadcast %c0_i32_170 : i32 to vector<1x256xi32>
    %492 = arith.addi %4, %491 : vector<1x256xi32>
    %c16_i32_171 = arith.constant 16 : i32
    %493 = vector.broadcast %c16_i32_171 : i32 to vector<1x256xi32>
    %494 = arith.cmpi slt, %492, %493 : vector<1x256xi32>
    %495 = arith.andi %490, %494 : vector<1x256xi1>
    %496 = arith.extui %495 : vector<1x256xi1> to vector<1x256xi32>
    %497 = arith.sitofp %496 : vector<1x256xi32> to vector<1x256xf32>
    %c240_i32_172 = arith.constant 240 : i32
    %498 = tpu.dynamic_rotate %282 by %c240_i32_172 dim 1 : vector<8x256xf32>, i32 -> vector<8x256xf32>
    %c16_i32_173 = arith.constant 16 : i32
    %499 = tpu.dynamic_rotate %282 by %c16_i32_173 dim 1 : vector<8x256xf32>, i32 -> vector<8x256xf32>
    %500 = vector.shape_cast %12 : vector<1x256xi1> to vector<1x256xi1>
    %501 = vector.broadcast %500 : vector<1x256xi1> to vector<8x256xi1>
    %502 = arith.select %501, %498, %499 : vector<8x256xi1>, vector<8x256xf32>
    %503 = vector.broadcast %497 : vector<1x256xf32> to vector<8x256xf32>
    %504 = arith.mulf %502, %503 : vector<8x256xf32>
    %c1_i32_174 = arith.constant 1 : i32
    %505 = vector.broadcast %c1_i32_174 : i32 to vector<1x256xi32>
    %506 = arith.addi %2, %505 : vector<1x256xi32>
    %c0_i32_175 = arith.constant 0 : i32
    %507 = vector.broadcast %c0_i32_175 : i32 to vector<1x256xi32>
    %508 = arith.cmpi sge, %506, %507 : vector<1x256xi32>
    %c1_i32_176 = arith.constant 1 : i32
    %509 = vector.broadcast %c1_i32_176 : i32 to vector<1x256xi32>
    %510 = arith.addi %2, %509 : vector<1x256xi32>
    %c16_i32_177 = arith.constant 16 : i32
    %511 = vector.broadcast %c16_i32_177 : i32 to vector<1x256xi32>
    %512 = arith.cmpi slt, %510, %511 : vector<1x256xi32>
    %513 = arith.andi %508, %512 : vector<1x256xi1>
    %c1_i32_178 = arith.constant 1 : i32
    %514 = vector.broadcast %c1_i32_178 : i32 to vector<1x256xi32>
    %515 = arith.addi %4, %514 : vector<1x256xi32>
    %c0_i32_179 = arith.constant 0 : i32
    %516 = vector.broadcast %c0_i32_179 : i32 to vector<1x256xi32>
    %517 = arith.cmpi sge, %515, %516 : vector<1x256xi32>
    %518 = arith.andi %513, %517 : vector<1x256xi1>
    %c1_i32_180 = arith.constant 1 : i32
    %519 = vector.broadcast %c1_i32_180 : i32 to vector<1x256xi32>
    %520 = arith.addi %4, %519 : vector<1x256xi32>
    %c16_i32_181 = arith.constant 16 : i32
    %521 = vector.broadcast %c16_i32_181 : i32 to vector<1x256xi32>
    %522 = arith.cmpi slt, %520, %521 : vector<1x256xi32>
    %523 = arith.andi %518, %522 : vector<1x256xi1>
    %524 = arith.extui %523 : vector<1x256xi1> to vector<1x256xi32>
    %525 = arith.sitofp %524 : vector<1x256xi32> to vector<1x256xf32>
    %c239_i32_182 = arith.constant 239 : i32
    %526 = tpu.dynamic_rotate %282 by %c239_i32_182 dim 1 : vector<8x256xf32>, i32 -> vector<8x256xf32>
    %c17_i32_183 = arith.constant 17 : i32
    %527 = tpu.dynamic_rotate %282 by %c17_i32_183 dim 1 : vector<8x256xf32>, i32 -> vector<8x256xf32>
    %528 = vector.shape_cast %12 : vector<1x256xi1> to vector<1x256xi1>
    %529 = vector.broadcast %528 : vector<1x256xi1> to vector<8x256xi1>
    %530 = arith.select %529, %526, %527 : vector<8x256xi1>, vector<8x256xf32>
    %531 = vector.broadcast %525 : vector<1x256xf32> to vector<8x256xf32>
    %532 = arith.mulf %530, %531 : vector<8x256xf32>
    %533 = tpu.concatenate %313, %341, %369, %397, %420, %448, %476, %504, %532 in 0 : vector<8x256xf32>, vector<8x256xf32>, vector<8x256xf32>, vector<8x256xf32>, vector<8x256xf32>, vector<8x256xf32>, vector<8x256xf32>, vector<8x256xf32>, vector<8x256xf32> -> vector<72x256xf32>
    %c0_184 = arith.constant 0 : index
    %c0_185 = arith.constant 0 : index
    %534 = vector.load %arg4[%c0_184, %c0_185] : memref<8x72xf32, #tpu.memory_space<vmem>>, vector<8x72xf32>
    %cst_186 = arith.constant dense<0.000000e+00> : vector<8x256xf32>
    %535 = tpu.matmul %534, %533, %cst_186 {dimension_numbers = #tpu.dot_dimension_numbers<[1], [0], [0], [1], [0, 0, 1, 1], [], []>} : vector<8x72xf32>, vector<72x256xf32>, vector<8x256xf32> -> vector<8x256xf32>
    %c0_187 = arith.constant 0 : index
    %c0_188 = arith.constant 0 : index
    %536 = vector.load %arg5[%c0_187, %c0_188] : memref<8x1xf32, #tpu.memory_space<vmem>>, vector<8x1xf32>
    %537 = vector.broadcast %536 : vector<8x1xf32> to vector<8x256xf32>
    %538 = arith.addf %535, %537 : vector<8x256xf32>
    %cst_189 = arith.constant 0.000000e+00 : f32
    %539 = vector.broadcast %cst_189 : f32 to vector<8x256xf32>
    %540 = arith.maximumf %538, %539 : vector<8x256xf32>
    %c0_190 = arith.constant 0 : index
    %c0_191 = arith.constant 0 : index
    %c0_192 = arith.constant 0 : index
    %541 = vector.load %arg10[%c0_190, %c0_191, %c0_192] : memref<1x8x256xf32, #tpu.memory_space<vmem>>, vector<1x8x256xf32>
    %542 = vector.shape_cast %541 : vector<1x8x256xf32> to vector<8x256xf32>
    %543 = vector.shape_cast %540 : vector<8x256xf32> to vector<1x8x256xf32>
    tpu.vector_store %arg10[%c0_190, %c0_191, %c0_192], %543 {strides = array<i32>} : memref<1x8x256xf32, #tpu.memory_space<vmem>>, vector<1x8x256xf32>,
    %c0_193 = arith.constant 0 : index
    %c0_194 = arith.constant 0 : index
    %544 = vector.load %arg6[%c0_193, %c0_194] : memref<256x128xf32, #tpu.memory_space<vmem>>, vector<256x128xf32>
    %cst_195 = arith.constant dense<0.000000e+00> : vector<8x128xf32>
    %545 = tpu.matmul %540, %544, %cst_195 {dimension_numbers = #tpu.dot_dimension_numbers<[1], [0], [0], [1], [0, 0, 1, 1], [], []>} : vector<8x256xf32>, vector<256x128xf32>, vector<8x128xf32> -> vector<8x128xf32>
    %c-1_i32_196 = arith.constant -1 : i32
    %546 = vector.broadcast %c-1_i32_196 : i32 to vector<1x128xi32>
    %547 = arith.addi %15, %546 : vector<1x128xi32>
    %c0_i32_197 = arith.constant 0 : i32
    %548 = vector.broadcast %c0_i32_197 : i32 to vector<1x128xi32>
    %549 = arith.cmpi sge, %547, %548 : vector<1x128xi32>
    %c-1_i32_198 = arith.constant -1 : i32
    %550 = vector.broadcast %c-1_i32_198 : i32 to vector<1x128xi32>
    %551 = arith.addi %15, %550 : vector<1x128xi32>
    %c8_i32 = arith.constant 8 : i32
    %552 = vector.broadcast %c8_i32 : i32 to vector<1x128xi32>
    %553 = arith.cmpi slt, %551, %552 : vector<1x128xi32>
    %554 = arith.andi %549, %553 : vector<1x128xi1>
    %c-1_i32_199 = arith.constant -1 : i32
    %555 = vector.broadcast %c-1_i32_199 : i32 to vector<1x128xi32>
    %556 = arith.addi %17, %555 : vector<1x128xi32>
    %c0_i32_200 = arith.constant 0 : i32
    %557 = vector.broadcast %c0_i32_200 : i32 to vector<1x128xi32>
    %558 = arith.cmpi sge, %556, %557 : vector<1x128xi32>
    %559 = arith.andi %554, %558 : vector<1x128xi1>
    %c-1_i32_201 = arith.constant -1 : i32
    %560 = vector.broadcast %c-1_i32_201 : i32 to vector<1x128xi32>
    %561 = arith.addi %17, %560 : vector<1x128xi32>
    %c8_i32_202 = arith.constant 8 : i32
    %562 = vector.broadcast %c8_i32_202 : i32 to vector<1x128xi32>
    %563 = arith.cmpi slt, %561, %562 : vector<1x128xi32>
    %564 = arith.andi %559, %563 : vector<1x128xi1>
    %565 = arith.extui %564 : vector<1x128xi1> to vector<1x128xi32>
    %566 = arith.sitofp %565 : vector<1x128xi32> to vector<1x128xf32>
    %c9_i32 = arith.constant 9 : i32
    %567 = tpu.dynamic_rotate %545 by %c9_i32 dim 1 : vector<8x128xf32>, i32 -> vector<8x128xf32>
    %c119_i32 = arith.constant 119 : i32
    %568 = tpu.dynamic_rotate %545 by %c119_i32 dim 1 : vector<8x128xf32>, i32 -> vector<8x128xf32>
    %569 = vector.shape_cast %25 : vector<1x128xi1> to vector<1x128xi1>
    %570 = vector.broadcast %569 : vector<1x128xi1> to vector<8x128xi1>
    %571 = arith.select %570, %567, %568 : vector<8x128xi1>, vector<8x128xf32>
    %572 = vector.broadcast %566 : vector<1x128xf32> to vector<8x128xf32>
    %573 = arith.mulf %571, %572 : vector<8x128xf32>
    %c-1_i32_203 = arith.constant -1 : i32
    %574 = vector.broadcast %c-1_i32_203 : i32 to vector<1x128xi32>
    %575 = arith.addi %15, %574 : vector<1x128xi32>
    %c0_i32_204 = arith.constant 0 : i32
    %576 = vector.broadcast %c0_i32_204 : i32 to vector<1x128xi32>
    %577 = arith.cmpi sge, %575, %576 : vector<1x128xi32>
    %c-1_i32_205 = arith.constant -1 : i32
    %578 = vector.broadcast %c-1_i32_205 : i32 to vector<1x128xi32>
    %579 = arith.addi %15, %578 : vector<1x128xi32>
    %c8_i32_206 = arith.constant 8 : i32
    %580 = vector.broadcast %c8_i32_206 : i32 to vector<1x128xi32>
    %581 = arith.cmpi slt, %579, %580 : vector<1x128xi32>
    %582 = arith.andi %577, %581 : vector<1x128xi1>
    %c0_i32_207 = arith.constant 0 : i32
    %583 = vector.broadcast %c0_i32_207 : i32 to vector<1x128xi32>
    %584 = arith.addi %17, %583 : vector<1x128xi32>
    %c0_i32_208 = arith.constant 0 : i32
    %585 = vector.broadcast %c0_i32_208 : i32 to vector<1x128xi32>
    %586 = arith.cmpi sge, %584, %585 : vector<1x128xi32>
    %587 = arith.andi %582, %586 : vector<1x128xi1>
    %c0_i32_209 = arith.constant 0 : i32
    %588 = vector.broadcast %c0_i32_209 : i32 to vector<1x128xi32>
    %589 = arith.addi %17, %588 : vector<1x128xi32>
    %c8_i32_210 = arith.constant 8 : i32
    %590 = vector.broadcast %c8_i32_210 : i32 to vector<1x128xi32>
    %591 = arith.cmpi slt, %589, %590 : vector<1x128xi32>
    %592 = arith.andi %587, %591 : vector<1x128xi1>
    %593 = arith.extui %592 : vector<1x128xi1> to vector<1x128xi32>
    %594 = arith.sitofp %593 : vector<1x128xi32> to vector<1x128xf32>
    %c8_i32_211 = arith.constant 8 : i32
    %595 = tpu.dynamic_rotate %545 by %c8_i32_211 dim 1 : vector<8x128xf32>, i32 -> vector<8x128xf32>
    %c120_i32 = arith.constant 120 : i32
    %596 = tpu.dynamic_rotate %545 by %c120_i32 dim 1 : vector<8x128xf32>, i32 -> vector<8x128xf32>
    %597 = vector.shape_cast %25 : vector<1x128xi1> to vector<1x128xi1>
    %598 = vector.broadcast %597 : vector<1x128xi1> to vector<8x128xi1>
    %599 = arith.select %598, %595, %596 : vector<8x128xi1>, vector<8x128xf32>
    %600 = vector.broadcast %594 : vector<1x128xf32> to vector<8x128xf32>
    %601 = arith.mulf %599, %600 : vector<8x128xf32>
    %c-1_i32_212 = arith.constant -1 : i32
    %602 = vector.broadcast %c-1_i32_212 : i32 to vector<1x128xi32>
    %603 = arith.addi %15, %602 : vector<1x128xi32>
    %c0_i32_213 = arith.constant 0 : i32
    %604 = vector.broadcast %c0_i32_213 : i32 to vector<1x128xi32>
    %605 = arith.cmpi sge, %603, %604 : vector<1x128xi32>
    %c-1_i32_214 = arith.constant -1 : i32
    %606 = vector.broadcast %c-1_i32_214 : i32 to vector<1x128xi32>
    %607 = arith.addi %15, %606 : vector<1x128xi32>
    %c8_i32_215 = arith.constant 8 : i32
    %608 = vector.broadcast %c8_i32_215 : i32 to vector<1x128xi32>
    %609 = arith.cmpi slt, %607, %608 : vector<1x128xi32>
    %610 = arith.andi %605, %609 : vector<1x128xi1>
    %c1_i32_216 = arith.constant 1 : i32
    %611 = vector.broadcast %c1_i32_216 : i32 to vector<1x128xi32>
    %612 = arith.addi %17, %611 : vector<1x128xi32>
    %c0_i32_217 = arith.constant 0 : i32
    %613 = vector.broadcast %c0_i32_217 : i32 to vector<1x128xi32>
    %614 = arith.cmpi sge, %612, %613 : vector<1x128xi32>
    %615 = arith.andi %610, %614 : vector<1x128xi1>
    %c1_i32_218 = arith.constant 1 : i32
    %616 = vector.broadcast %c1_i32_218 : i32 to vector<1x128xi32>
    %617 = arith.addi %17, %616 : vector<1x128xi32>
    %c8_i32_219 = arith.constant 8 : i32
    %618 = vector.broadcast %c8_i32_219 : i32 to vector<1x128xi32>
    %619 = arith.cmpi slt, %617, %618 : vector<1x128xi32>
    %620 = arith.andi %615, %619 : vector<1x128xi1>
    %621 = arith.extui %620 : vector<1x128xi1> to vector<1x128xi32>
    %622 = arith.sitofp %621 : vector<1x128xi32> to vector<1x128xf32>
    %c7_i32_220 = arith.constant 7 : i32
    %623 = tpu.dynamic_rotate %545 by %c7_i32_220 dim 1 : vector<8x128xf32>, i32 -> vector<8x128xf32>
    %c121_i32 = arith.constant 121 : i32
    %624 = tpu.dynamic_rotate %545 by %c121_i32 dim 1 : vector<8x128xf32>, i32 -> vector<8x128xf32>
    %625 = vector.shape_cast %25 : vector<1x128xi1> to vector<1x128xi1>
    %626 = vector.broadcast %625 : vector<1x128xi1> to vector<8x128xi1>
    %627 = arith.select %626, %623, %624 : vector<8x128xi1>, vector<8x128xf32>
    %628 = vector.broadcast %622 : vector<1x128xf32> to vector<8x128xf32>
    %629 = arith.mulf %627, %628 : vector<8x128xf32>
    %c0_i32_221 = arith.constant 0 : i32
    %630 = vector.broadcast %c0_i32_221 : i32 to vector<1x128xi32>
    %631 = arith.addi %15, %630 : vector<1x128xi32>
    %c0_i32_222 = arith.constant 0 : i32
    %632 = vector.broadcast %c0_i32_222 : i32 to vector<1x128xi32>
    %633 = arith.cmpi sge, %631, %632 : vector<1x128xi32>
    %c0_i32_223 = arith.constant 0 : i32
    %634 = vector.broadcast %c0_i32_223 : i32 to vector<1x128xi32>
    %635 = arith.addi %15, %634 : vector<1x128xi32>
    %c8_i32_224 = arith.constant 8 : i32
    %636 = vector.broadcast %c8_i32_224 : i32 to vector<1x128xi32>
    %637 = arith.cmpi slt, %635, %636 : vector<1x128xi32>
    %638 = arith.andi %633, %637 : vector<1x128xi1>
    %c-1_i32_225 = arith.constant -1 : i32
    %639 = vector.broadcast %c-1_i32_225 : i32 to vector<1x128xi32>
    %640 = arith.addi %17, %639 : vector<1x128xi32>
    %c0_i32_226 = arith.constant 0 : i32
    %641 = vector.broadcast %c0_i32_226 : i32 to vector<1x128xi32>
    %642 = arith.cmpi sge, %640, %641 : vector<1x128xi32>
    %643 = arith.andi %638, %642 : vector<1x128xi1>
    %c-1_i32_227 = arith.constant -1 : i32
    %644 = vector.broadcast %c-1_i32_227 : i32 to vector<1x128xi32>
    %645 = arith.addi %17, %644 : vector<1x128xi32>
    %c8_i32_228 = arith.constant 8 : i32
    %646 = vector.broadcast %c8_i32_228 : i32 to vector<1x128xi32>
    %647 = arith.cmpi slt, %645, %646 : vector<1x128xi32>
    %648 = arith.andi %643, %647 : vector<1x128xi1>
    %649 = arith.extui %648 : vector<1x128xi1> to vector<1x128xi32>
    %650 = arith.sitofp %649 : vector<1x128xi32> to vector<1x128xf32>
    %c1_i32_229 = arith.constant 1 : i32
    %651 = tpu.dynamic_rotate %545 by %c1_i32_229 dim 1 : vector<8x128xf32>, i32 -> vector<8x128xf32>
    %c127_i32_230 = arith.constant 127 : i32
    %652 = tpu.dynamic_rotate %545 by %c127_i32_230 dim 1 : vector<8x128xf32>, i32 -> vector<8x128xf32>
    %653 = vector.shape_cast %25 : vector<1x128xi1> to vector<1x128xi1>
    %654 = vector.broadcast %653 : vector<1x128xi1> to vector<8x128xi1>
    %655 = arith.select %654, %651, %652 : vector<8x128xi1>, vector<8x128xf32>
    %656 = vector.broadcast %650 : vector<1x128xf32> to vector<8x128xf32>
    %657 = arith.mulf %655, %656 : vector<8x128xf32>
    %c0_i32_231 = arith.constant 0 : i32
    %658 = vector.broadcast %c0_i32_231 : i32 to vector<1x128xi32>
    %659 = arith.addi %15, %658 : vector<1x128xi32>
    %c0_i32_232 = arith.constant 0 : i32
    %660 = vector.broadcast %c0_i32_232 : i32 to vector<1x128xi32>
    %661 = arith.cmpi sge, %659, %660 : vector<1x128xi32>
    %c0_i32_233 = arith.constant 0 : i32
    %662 = vector.broadcast %c0_i32_233 : i32 to vector<1x128xi32>
    %663 = arith.addi %15, %662 : vector<1x128xi32>
    %c8_i32_234 = arith.constant 8 : i32
    %664 = vector.broadcast %c8_i32_234 : i32 to vector<1x128xi32>
    %665 = arith.cmpi slt, %663, %664 : vector<1x128xi32>
    %666 = arith.andi %661, %665 : vector<1x128xi1>
    %c0_i32_235 = arith.constant 0 : i32
    %667 = vector.broadcast %c0_i32_235 : i32 to vector<1x128xi32>
    %668 = arith.addi %17, %667 : vector<1x128xi32>
    %c0_i32_236 = arith.constant 0 : i32
    %669 = vector.broadcast %c0_i32_236 : i32 to vector<1x128xi32>
    %670 = arith.cmpi sge, %668, %669 : vector<1x128xi32>
    %671 = arith.andi %666, %670 : vector<1x128xi1>
    %c0_i32_237 = arith.constant 0 : i32
    %672 = vector.broadcast %c0_i32_237 : i32 to vector<1x128xi32>
    %673 = arith.addi %17, %672 : vector<1x128xi32>
    %c8_i32_238 = arith.constant 8 : i32
    %674 = vector.broadcast %c8_i32_238 : i32 to vector<1x128xi32>
    %675 = arith.cmpi slt, %673, %674 : vector<1x128xi32>
    %676 = arith.andi %671, %675 : vector<1x128xi1>
    %677 = arith.extui %676 : vector<1x128xi1> to vector<1x128xi32>
    %678 = arith.sitofp %677 : vector<1x128xi32> to vector<1x128xf32>
    %679 = vector.broadcast %678 : vector<1x128xf32> to vector<8x128xf32>
    %680 = arith.mulf %545, %679 : vector<8x128xf32>
    %c0_i32_239 = arith.constant 0 : i32
    %681 = vector.broadcast %c0_i32_239 : i32 to vector<1x128xi32>
    %682 = arith.addi %15, %681 : vector<1x128xi32>
    %c0_i32_240 = arith.constant 0 : i32
    %683 = vector.broadcast %c0_i32_240 : i32 to vector<1x128xi32>
    %684 = arith.cmpi sge, %682, %683 : vector<1x128xi32>
    %c0_i32_241 = arith.constant 0 : i32
    %685 = vector.broadcast %c0_i32_241 : i32 to vector<1x128xi32>
    %686 = arith.addi %15, %685 : vector<1x128xi32>
    %c8_i32_242 = arith.constant 8 : i32
    %687 = vector.broadcast %c8_i32_242 : i32 to vector<1x128xi32>
    %688 = arith.cmpi slt, %686, %687 : vector<1x128xi32>
    %689 = arith.andi %684, %688 : vector<1x128xi1>
    %c1_i32_243 = arith.constant 1 : i32
    %690 = vector.broadcast %c1_i32_243 : i32 to vector<1x128xi32>
    %691 = arith.addi %17, %690 : vector<1x128xi32>
    %c0_i32_244 = arith.constant 0 : i32
    %692 = vector.broadcast %c0_i32_244 : i32 to vector<1x128xi32>
    %693 = arith.cmpi sge, %691, %692 : vector<1x128xi32>
    %694 = arith.andi %689, %693 : vector<1x128xi1>
    %c1_i32_245 = arith.constant 1 : i32
    %695 = vector.broadcast %c1_i32_245 : i32 to vector<1x128xi32>
    %696 = arith.addi %17, %695 : vector<1x128xi32>
    %c8_i32_246 = arith.constant 8 : i32
    %697 = vector.broadcast %c8_i32_246 : i32 to vector<1x128xi32>
    %698 = arith.cmpi slt, %696, %697 : vector<1x128xi32>
    %699 = arith.andi %694, %698 : vector<1x128xi1>
    %700 = arith.extui %699 : vector<1x128xi1> to vector<1x128xi32>
    %701 = arith.sitofp %700 : vector<1x128xi32> to vector<1x128xf32>
    %c127_i32_247 = arith.constant 127 : i32
    %702 = tpu.dynamic_rotate %545 by %c127_i32_247 dim 1 : vector<8x128xf32>, i32 -> vector<8x128xf32>
    %c1_i32_248 = arith.constant 1 : i32
    %703 = tpu.dynamic_rotate %545 by %c1_i32_248 dim 1 : vector<8x128xf32>, i32 -> vector<8x128xf32>
    %704 = vector.shape_cast %25 : vector<1x128xi1> to vector<1x128xi1>
    %705 = vector.broadcast %704 : vector<1x128xi1> to vector<8x128xi1>
    %706 = arith.select %705, %702, %703 : vector<8x128xi1>, vector<8x128xf32>
    %707 = vector.broadcast %701 : vector<1x128xf32> to vector<8x128xf32>
    %708 = arith.mulf %706, %707 : vector<8x128xf32>
    %c1_i32_249 = arith.constant 1 : i32
    %709 = vector.broadcast %c1_i32_249 : i32 to vector<1x128xi32>
    %710 = arith.addi %15, %709 : vector<1x128xi32>
    %c0_i32_250 = arith.constant 0 : i32
    %711 = vector.broadcast %c0_i32_250 : i32 to vector<1x128xi32>
    %712 = arith.cmpi sge, %710, %711 : vector<1x128xi32>
    %c1_i32_251 = arith.constant 1 : i32
    %713 = vector.broadcast %c1_i32_251 : i32 to vector<1x128xi32>
    %714 = arith.addi %15, %713 : vector<1x128xi32>
    %c8_i32_252 = arith.constant 8 : i32
    %715 = vector.broadcast %c8_i32_252 : i32 to vector<1x128xi32>
    %716 = arith.cmpi slt, %714, %715 : vector<1x128xi32>
    %717 = arith.andi %712, %716 : vector<1x128xi1>
    %c-1_i32_253 = arith.constant -1 : i32
    %718 = vector.broadcast %c-1_i32_253 : i32 to vector<1x128xi32>
    %719 = arith.addi %17, %718 : vector<1x128xi32>
    %c0_i32_254 = arith.constant 0 : i32
    %720 = vector.broadcast %c0_i32_254 : i32 to vector<1x128xi32>
    %721 = arith.cmpi sge, %719, %720 : vector<1x128xi32>
    %722 = arith.andi %717, %721 : vector<1x128xi1>
    %c-1_i32_255 = arith.constant -1 : i32
    %723 = vector.broadcast %c-1_i32_255 : i32 to vector<1x128xi32>
    %724 = arith.addi %17, %723 : vector<1x128xi32>
    %c8_i32_256 = arith.constant 8 : i32
    %725 = vector.broadcast %c8_i32_256 : i32 to vector<1x128xi32>
    %726 = arith.cmpi slt, %724, %725 : vector<1x128xi32>
    %727 = arith.andi %722, %726 : vector<1x128xi1>
    %728 = arith.extui %727 : vector<1x128xi1> to vector<1x128xi32>
    %729 = arith.sitofp %728 : vector<1x128xi32> to vector<1x128xf32>
    %c121_i32_257 = arith.constant 121 : i32
    %730 = tpu.dynamic_rotate %545 by %c121_i32_257 dim 1 : vector<8x128xf32>, i32 -> vector<8x128xf32>
    %c7_i32_258 = arith.constant 7 : i32
    %731 = tpu.dynamic_rotate %545 by %c7_i32_258 dim 1 : vector<8x128xf32>, i32 -> vector<8x128xf32>
    %732 = vector.shape_cast %25 : vector<1x128xi1> to vector<1x128xi1>
    %733 = vector.broadcast %732 : vector<1x128xi1> to vector<8x128xi1>
    %734 = arith.select %733, %730, %731 : vector<8x128xi1>, vector<8x128xf32>
    %735 = vector.broadcast %729 : vector<1x128xf32> to vector<8x128xf32>
    %736 = arith.mulf %734, %735 : vector<8x128xf32>
    %c1_i32_259 = arith.constant 1 : i32
    %737 = vector.broadcast %c1_i32_259 : i32 to vector<1x128xi32>
    %738 = arith.addi %15, %737 : vector<1x128xi32>
    %c0_i32_260 = arith.constant 0 : i32
    %739 = vector.broadcast %c0_i32_260 : i32 to vector<1x128xi32>
    %740 = arith.cmpi sge, %738, %739 : vector<1x128xi32>
    %c1_i32_261 = arith.constant 1 : i32
    %741 = vector.broadcast %c1_i32_261 : i32 to vector<1x128xi32>
    %742 = arith.addi %15, %741 : vector<1x128xi32>
    %c8_i32_262 = arith.constant 8 : i32
    %743 = vector.broadcast %c8_i32_262 : i32 to vector<1x128xi32>
    %744 = arith.cmpi slt, %742, %743 : vector<1x128xi32>
    %745 = arith.andi %740, %744 : vector<1x128xi1>
    %c0_i32_263 = arith.constant 0 : i32
    %746 = vector.broadcast %c0_i32_263 : i32 to vector<1x128xi32>
    %747 = arith.addi %17, %746 : vector<1x128xi32>
    %c0_i32_264 = arith.constant 0 : i32
    %748 = vector.broadcast %c0_i32_264 : i32 to vector<1x128xi32>
    %749 = arith.cmpi sge, %747, %748 : vector<1x128xi32>
    %750 = arith.andi %745, %749 : vector<1x128xi1>
    %c0_i32_265 = arith.constant 0 : i32
    %751 = vector.broadcast %c0_i32_265 : i32 to vector<1x128xi32>
    %752 = arith.addi %17, %751 : vector<1x128xi32>
    %c8_i32_266 = arith.constant 8 : i32
    %753 = vector.broadcast %c8_i32_266 : i32 to vector<1x128xi32>
    %754 = arith.cmpi slt, %752, %753 : vector<1x128xi32>
    %755 = arith.andi %750, %754 : vector<1x128xi1>
    %756 = arith.extui %755 : vector<1x128xi1> to vector<1x128xi32>
    %757 = arith.sitofp %756 : vector<1x128xi32> to vector<1x128xf32>
    %c120_i32_267 = arith.constant 120 : i32
    %758 = tpu.dynamic_rotate %545 by %c120_i32_267 dim 1 : vector<8x128xf32>, i32 -> vector<8x128xf32>
    %c8_i32_268 = arith.constant 8 : i32
    %759 = tpu.dynamic_rotate %545 by %c8_i32_268 dim 1 : vector<8x128xf32>, i32 -> vector<8x128xf32>
    %760 = vector.shape_cast %25 : vector<1x128xi1> to vector<1x128xi1>
    %761 = vector.broadcast %760 : vector<1x128xi1> to vector<8x128xi1>
    %762 = arith.select %761, %758, %759 : vector<8x128xi1>, vector<8x128xf32>
    %763 = vector.broadcast %757 : vector<1x128xf32> to vector<8x128xf32>
    %764 = arith.mulf %762, %763 : vector<8x128xf32>
    %c1_i32_269 = arith.constant 1 : i32
    %765 = vector.broadcast %c1_i32_269 : i32 to vector<1x128xi32>
    %766 = arith.addi %15, %765 : vector<1x128xi32>
    %c0_i32_270 = arith.constant 0 : i32
    %767 = vector.broadcast %c0_i32_270 : i32 to vector<1x128xi32>
    %768 = arith.cmpi sge, %766, %767 : vector<1x128xi32>
    %c1_i32_271 = arith.constant 1 : i32
    %769 = vector.broadcast %c1_i32_271 : i32 to vector<1x128xi32>
    %770 = arith.addi %15, %769 : vector<1x128xi32>
    %c8_i32_272 = arith.constant 8 : i32
    %771 = vector.broadcast %c8_i32_272 : i32 to vector<1x128xi32>
    %772 = arith.cmpi slt, %770, %771 : vector<1x128xi32>
    %773 = arith.andi %768, %772 : vector<1x128xi1>
    %c1_i32_273 = arith.constant 1 : i32
    %774 = vector.broadcast %c1_i32_273 : i32 to vector<1x128xi32>
    %775 = arith.addi %17, %774 : vector<1x128xi32>
    %c0_i32_274 = arith.constant 0 : i32
    %776 = vector.broadcast %c0_i32_274 : i32 to vector<1x128xi32>
    %777 = arith.cmpi sge, %775, %776 : vector<1x128xi32>
    %778 = arith.andi %773, %777 : vector<1x128xi1>
    %c1_i32_275 = arith.constant 1 : i32
    %779 = vector.broadcast %c1_i32_275 : i32 to vector<1x128xi32>
    %780 = arith.addi %17, %779 : vector<1x128xi32>
    %c8_i32_276 = arith.constant 8 : i32
    %781 = vector.broadcast %c8_i32_276 : i32 to vector<1x128xi32>
    %782 = arith.cmpi slt, %780, %781 : vector<1x128xi32>
    %783 = arith.andi %778, %782 : vector<1x128xi1>
    %784 = arith.extui %783 : vector<1x128xi1> to vector<1x128xi32>
    %785 = arith.sitofp %784 : vector<1x128xi32> to vector<1x128xf32>
    %c119_i32_277 = arith.constant 119 : i32
    %786 = tpu.dynamic_rotate %545 by %c119_i32_277 dim 1 : vector<8x128xf32>, i32 -> vector<8x128xf32>
    %c9_i32_278 = arith.constant 9 : i32
    %787 = tpu.dynamic_rotate %545 by %c9_i32_278 dim 1 : vector<8x128xf32>, i32 -> vector<8x128xf32>
    %788 = vector.shape_cast %25 : vector<1x128xi1> to vector<1x128xi1>
    %789 = vector.broadcast %788 : vector<1x128xi1> to vector<8x128xi1>
    %790 = arith.select %789, %786, %787 : vector<8x128xi1>, vector<8x128xf32>
    %791 = vector.broadcast %785 : vector<1x128xf32> to vector<8x128xf32>
    %792 = arith.mulf %790, %791 : vector<8x128xf32>
    %793 = tpu.concatenate %573, %601, %629, %657, %680, %708, %736, %764, %792 in 0 : vector<8x128xf32>, vector<8x128xf32>, vector<8x128xf32>, vector<8x128xf32>, vector<8x128xf32>, vector<8x128xf32>, vector<8x128xf32>, vector<8x128xf32>, vector<8x128xf32> -> vector<72x128xf32>
    %c0_279 = arith.constant 0 : index
    %c0_280 = arith.constant 0 : index
    %794 = vector.load %arg7[%c0_279, %c0_280] : memref<16x72xf32, #tpu.memory_space<vmem>>, vector<16x72xf32>
    %cst_281 = arith.constant dense<0.000000e+00> : vector<16x128xf32>
    %795 = tpu.matmul %794, %793, %cst_281 {dimension_numbers = #tpu.dot_dimension_numbers<[1], [0], [0], [1], [0, 0, 1, 1], [], []>} : vector<16x72xf32>, vector<72x128xf32>, vector<16x128xf32> -> vector<16x128xf32>
    %c0_282 = arith.constant 0 : index
    %c0_283 = arith.constant 0 : index
    %796 = vector.load %arg8[%c0_282, %c0_283] : memref<16x1xf32, #tpu.memory_space<vmem>>, vector<16x1xf32>
    %797 = vector.broadcast %796 : vector<16x1xf32> to vector<16x128xf32>
    %798 = arith.addf %795, %797 : vector<16x128xf32>
    %cst_284 = arith.constant 0.000000e+00 : f32
    %799 = vector.broadcast %cst_284 : f32 to vector<16x128xf32>
    %800 = arith.maximumf %798, %799 : vector<16x128xf32>
    %c0_285 = arith.constant 0 : index
    %c0_286 = arith.constant 0 : index
    %c0_287 = arith.constant 0 : index
    %801 = vector.load %arg11[%c0_285, %c0_286, %c0_287] : memref<1x16x128xf32, #tpu.memory_space<vmem>>, vector<1x16x128xf32>
    %802 = vector.shape_cast %801 : vector<1x16x128xf32> to vector<16x128xf32>
    %803 = vector.shape_cast %800 : vector<16x128xf32> to vector<1x16x128xf32>
    tpu.vector_store %arg11[%c0_285, %c0_286, %c0_287], %803 {strides = array<i32>} : memref<1x16x128xf32, #tpu.memory_space<vmem>>, vector<1x16x128xf32>,
    return
  }
  func.func @transform_0(%arg0: i32) -> (i32, i32, i32) {
    %c0_i32 = arith.constant 0 : i32
    %c0_i32_0 = arith.constant 0 : i32
    %c0_i32_1 = arith.constant 0 : i32
    return %arg0, %c0_i32, %c0_i32_0 : i32, i32, i32
  }
  func.func @transform_1(%arg0: i32) -> (i32, i32) {
    %c0_i32 = arith.constant 0 : i32
    %c0_i32_0 = arith.constant 0 : i32
    %c0_i32_1 = arith.constant 0 : i32
    return %c0_i32, %c0_i32_0 : i32, i32
  }
  func.func @transform_2(%arg0: i32) -> (i32, i32) {
    %c0_i32 = arith.constant 0 : i32
    %c0_i32_0 = arith.constant 0 : i32
    %c0_i32_1 = arith.constant 0 : i32
    return %c0_i32, %c0_i32_0 : i32, i32
  }
  func.func @transform_3(%arg0: i32) -> (i32, i32) {
    %c0_i32 = arith.constant 0 : i32
    %c0_i32_0 = arith.constant 0 : i32
    %c0_i32_1 = arith.constant 0 : i32
    return %c0_i32, %c0_i32_0 : i32, i32
  }
  func.func @transform_4(%arg0: i32) -> (i32, i32) {
    %c0_i32 = arith.constant 0 : i32
    %c0_i32_0 = arith.constant 0 : i32
    %c0_i32_1 = arith.constant 0 : i32
    return %c0_i32, %c0_i32_0 : i32, i32
  }
  func.func @transform_5(%arg0: i32) -> (i32, i32) {
    %c0_i32 = arith.constant 0 : i32
    %c0_i32_0 = arith.constant 0 : i32
    %c0_i32_1 = arith.constant 0 : i32
    return %c0_i32, %c0_i32_0 : i32, i32
  }
  func.func @transform_6(%arg0: i32) -> (i32, i32) {
    %c0_i32 = arith.constant 0 : i32
    %c0_i32_0 = arith.constant 0 : i32
    %c0_i32_1 = arith.constant 0 : i32
    return %c0_i32, %c0_i32_0 : i32, i32
  }
  func.func @transform_7(%arg0: i32) -> (i32, i32) {
    %c0_i32 = arith.constant 0 : i32
    %c0_i32_0 = arith.constant 0 : i32
    %c0_i32_1 = arith.constant 0 : i32
    return %c0_i32, %c0_i32_0 : i32, i32
  }
  func.func @transform_8(%arg0: i32) -> (i32, i32, i32) {
    %c0_i32 = arith.constant 0 : i32
    %c0_i32_0 = arith.constant 0 : i32
    %c0_i32_1 = arith.constant 0 : i32
    return %arg0, %c0_i32, %c0_i32_0 : i32, i32, i32
  }
  func.func @transform_9(%arg0: i32) -> (i32, i32, i32) {
    %c0_i32 = arith.constant 0 : i32
    %c0_i32_0 = arith.constant 0 : i32
    %c0_i32_1 = arith.constant 0 : i32
    return %arg0, %c0_i32, %c0_i32_0 : i32, i32, i32
  }
  func.func @transform_10(%arg0: i32) -> (i32, i32, i32) {
    %c0_i32 = arith.constant 0 : i32
    %c0_i32_0 = arith.constant 0 : i32
    %c0_i32_1 = arith.constant 0 : i32
    return %arg0, %c0_i32, %c0_i32_0 : i32, i32, i32
  }
}

</mosaic_0001>

<bundles_post_ra>
// kernel: _fused_forward.1
= control target key start
LH: loop header
LB: loop body
LE: loop exit
PB: predicated region body
PF: predicated region fallthrough
CT: control target
= control target key end

     0   :  { %s1596_s13 = smov 0   ;;  %s2369_s0 = inlined_call_operand.vmem [shape: f32[2,8,256], index: 0, kind: input, shape index: {}]   ;;  %s2370_s1 = inlined_call_operand.vmem [shape: f32[8,72], index: 1, kind: input, shape index: {}]   ;;  %s2371_s2 = inlined_call_operand.vmem [shape: f32[8,1], index: 2, kind: input, shape index: {}]   ;;  %s2372_s3 = inlined_call_operand.vmem [shape: f32[8,72], index: 3, kind: input, shape index: {}]   ;;  %s2373_s4 = inlined_call_operand.vmem [shape: f32[8,1], index: 4, kind: input, shape index: {}]   ;;  %s2374_s5 = inlined_call_operand.vmem [shape: f32[256,128], index: 5, kind: input, shape index: {}]   ;;  %s2375_s6 = inlined_call_operand.vmem [shape: f32[16,72], index: 6, kind: input, shape index: {}]   ;;  %s2376_s7 = inlined_call_operand.vmem [shape: f32[16,1], index: 7, kind: input, shape index: {}]   ;;  %s2377_s8 = inlined_call_operand.vmem [shape: f32[2,8,256], index: 8, kind: output, shape index: {0}]   ;;  %s2378_s9 = inlined_call_operand.vmem [shape: f32[2,8,256], index: 9, kind: output, shape index: {1}]   ;;  %s2379_s10 = inlined_call_operand.vmem [shape: f32[2,16,128], index: 10, kind: output, shape index: {2}]  }
   0x1 LB: > { %s1294_s14 = sadd.s32 4294967295, %s1523_s13   ;;  %p1298_p0 = scmp.ge.s32.totalorder %s1523_s13, 1  ;;  %s1523_s13 = sphi %s1596_s13, %s21_s13  }
   0x2   : > { %p317_p1 = scmp.lt.s32.totalorder %s1523_s13, 3 }
   0x4   : > { %p318_p2 = pnand %p1298_p0, %p317_p1 }
   0x5   : > { %v385_v0 = vlaneseq (!%p318_p2)  ;;  %p365_p3 = scmp.lt.s32.totalorder (!%p318_p2), %s1294_s14, 1  ;;  %v1525_v1 = vmov (!%p318_p2), 0   ;;  %v1526_v3 = vmov (!%p318_p2), 0.0   ;;  %s1527_s15 = smov (!%p318_p2), 127   ;;  %v626_v7 = vld [vmem:[%s2371_s2] sm:$0xff] (!%p318_p2)  ;;  %v891_v46 = vld [vmem:[%s2374_s5 + $0x68] sm:$0xff] (!%p318_p2) }
   0x6   : > { %321 = sbr.rel (%p318_p2) target bundleno = 1364 (0x554), region = 52  ;;  %1515 = vset.pattern.permute.xlu0 (!%p318_p2), %v1525_v1  ;;  %1516 = vset.pattern.permute.xlu1 (!%p318_p2), %v1525_v1  ;;  %s1528_s20 = smov (!%p318_p2), 17   ;;  %v793_v47 = vld [vmem:[%s2372_s3] sm:$0xff] (!%p318_p2) }
   0x7   : > { %v1606_v2 = vand.u32 (!%p318_p2), 127, %v385_v0  ;;  %700 = vmatprep.mubr.f32.mxu0 (!%p318_p2), %v1526_v3  ;;  %867 = vmatprep.mubr.f32.mxu1 (!%p318_p2), %v1526_v3  ;;  %s1529_s21 = smov (!%p318_p2), 111   ;;  %s1530_s22 = smov (!%p318_p2), 16   ;;  %v453_v9 = vshrl.u32 (!%p318_p2), %v385_v0, 7 }
   0x8   : > { %s1531_s23 = smov (!%p318_p2), 112   ;;  %s1532_s24 = smov (!%p318_p2), 15  }
   0x9   : > { %398 = vrot.lane.b32.xlu0 (!%p318_p2), %v1606_v2, %s1527_s15  ;;  %v1615_v4 = vadd.s32 (!%p318_p2), 128, %v1606_v2  ;;  %s1533_s25 = smov (!%p318_p2), 113   ;;  %s1534_s26 = smov (!%p318_p2), 1   ;;  %v394_v8 = vadd.s32 (!%p318_p2), 1, %v1606_v2  ;;  %vm409_vm0 = vcmp.eq.s32.totalorder (!%p318_p2), %v1606_v2, 127  ;;  %v1664_v11 = vsub.s32 (!%p318_p2), 0, %v453_v9 }
   0xa   : > { %vm2384_vm3 = vcmp.lt.s32.totalorder (!%p318_p2), %v1606_v2, 127  ;;  %v1676_v16 = vshra.s32 (!%p318_p2), %v1606_v2, 4  ;;  %v390_v25 = vand.u32 (!%p318_p2), 15, %v1606_v2  ;;  %vm2383_vm12 = vcmp.lt.s32.totalorder (!%p318_p2), %v1606_v2, 111  ;;  %s1537_s27 = smov (!%p318_p2), 120   ;;  %s1538_s28 = smov (!%p318_p2), 8  }
   0xb   : > { %v410_v10 = vsel (!%p318_p2), %vm409_vm0, 0, %v394_v8  ;;  %v395_v12 = vadd.s32 (!%p318_p2), 1, %v1615_v4  ;;  %vm393_vm1 = vcmp.eq.s32.totalorder (!%p318_p2), %v1615_v4, 255  ;;  %v1669_v14 = vshra.s32 (!%p318_p2), %v1615_v4, 4  ;;  %s1539_s29 = smov (!%p318_p2), 121   ;;  %s1540_s30 = smov (!%p318_p2), 7  }
   0xc   : > { %v391_v20 = vand.u32 (!%p318_p2), 15, %v1615_v4  ;;  %v414_v26 = vadd.s32 (!%p318_p2), 4294967295, %v1676_v16  ;;  %v1692_v32 = vadd.s32 (!%p318_p2), 4294967295, %v390_v25  ;;  %vm2382_vm0 = vcmp.lt.s32.totalorder (!%p318_p2), %v1606_v2, 17 }
   0xd   : > { %s2441_s14 = smov (!%p365_p3, %s1294_s14), 1  ;;  %400 = vrot.lane.b32.xlu0 %v1615_v4, %s1527_s15  ;;  %v397_v19 = vsel %vm393_vm1, 0, %v395_v12  ;;  %v415_v22 = vadd.s32 4294967295, %v1669_v14  ;;  %vm2381_vm1 = vcmp.lt.s32.totalorder %v1606_v2, 16  ;;  %v1734_v45 = vadd.s32 1, %v390_v25 }
   0xe   : > { %s1612_s16 = sshll.u32 %s2441_s14, 4  ;;  %v1689_v29 = vadd.s32 4294967295, %v391_v20  ;;  %vm416_vm8 = vcmp.ge.s32.totalorder %v414_v26, 0  ;;  %vm418_vm9 = vcmp.lt.s32.totalorder %v414_v26, 16  ;;  %vm2385_vm14 = vcmp.ge.s32.totalorder %v1692_v32, 0 }
   0xf   : > { %s369_s19 = scalar_lea.vmem %s2369_s0, %s1612_s16  ;;  %vm417_vm6 = vcmp.ge.s32.totalorder %v415_v22, 0  ;;  %vm419_vm7 = vcmp.lt.s32.totalorder %v415_v22, 16  ;;  %vm1701_vm13 = vmand %vm416_vm8, %vm418_vm9  ;;  %vm528_vm8 = vcmp.ge.s32.totalorder %v1676_v16, 0  ;;  %vm530_vm9 = vcmp.lt.s32.totalorder %v1676_v16, 16  ;;  %s374_s14 = scalar_lea.vmem %s2377_s8, %s1612_s16 }
  0x10   : > { %v1621_v5 = vld [vmem:[%s369_s19] sm:$0xff]  ;;  %v1627_v6 = vld [vmem:[%s369_s19 + $0x8] sm:$0xff]  ;;  %vm1695_vm10 = vmand %vm417_vm6, %vm419_vm7  ;;  %vm2386_vm11 = vcmp.ge.s32.totalorder %v1689_v29, 0  ;;  %v1766_v54 = vsel %vm1701_vm13, 1.0, %v1526_v3  ;;  %vm2388_vm7 = vcmp.lt.s32.totalorder %v1734_v45, 16 }
  0x11   : > { %436 = vrot.lane.b32.xlu1 %v1621_v5, %s1528_s20  ;;  %443 = vrot.lane.b32.xlu0 %v1621_v5, %s1529_s21  ;;  %vm427_vm15 = vmand %vm1695_vm10, %vm2386_vm11  ;;  %v1732_v44 = vsel %vm1695_vm10, 1.0, %v1526_v3 }
  0x12   : > { %v1727_v43 = vsel %vm427_vm15, 1.0, %v1526_v3  ;;  %vm529_vm15 = vcmp.ge.s32.totalorder %v1669_v14, 0 }
  0x15   : > { %438 = vrot.lane.b32.xlu1 %v1627_v6, %s1528_s20  ;;  %478 = vrot.lane.b32.xlu0 %v1621_v5, %s1530_s22 }
  0x19   : > { %445 = vrot.lane.b32.xlu1 %v1627_v6, %s1529_s21  ;;  %485 = vrot.lane.b32.xlu0 %v1621_v5, %s1531_s23 }
  0x1d   : > { %480 = vrot.lane.b32.xlu1 %v1627_v6, %s1530_s22  ;;  %510 = vrot.lane.b32.xlu0 %v1621_v5, %s1532_s24 }
  0x21   : > { %487 = vrot.lane.b32.xlu1 %v1627_v6, %s1531_s23  ;;  %517 = vrot.lane.b32.xlu0 %v1621_v5, %s1533_s25 }
  0x25   : > { %512 = vrot.lane.b32.xlu1 %v1627_v6, %s1532_s24  ;;  %542 = vrot.lane.b32.xlu0 %v1621_v5, %s1534_s26 }
  0x29   : > { %519 = vrot.lane.b32.xlu1 %v1627_v6, %s1533_s25  ;;  %549 = vrot.lane.b32.xlu0 %v1621_v5, %s1527_s15 }
  0x2d   : > { %544 = vrot.lane.b32.xlu1 %v1627_v6, %s1534_s26  ;;  %629 = vperm.xlu0 %1515, %v626_v7   ;;  %v1796_v7 = vadd.s32 1, %v391_v20 }
  0x31   : > { %551 = vrot.lane.b32.xlu1 %v1627_v6, %s1527_s15 }
  0x7b   : > { %v399_v13 = vpop.permute.xlu0 %398 }
  0x7c   : > { %vm411_vm2 = vcmp.eq.s32.totalorder %v399_v13, %v410_v10 }
  0x7d   : > { %v1672_v15 = vsel %vm411_vm2, 1, %v1525_v1  ;;  %vm426_vm2 = vmand %vm1701_vm13, %vm2385_vm14 }
  0x7e   : > { %v999_v17 = vrot.slane %v1672_v15, %v1664_v11  ;;  %v1761_v53 = vsel %vm426_vm2, 1.0, %v1526_v3  ;;  %vm531_vm2 = vcmp.lt.s32.totalorder %v1669_v14, 16 }
  0x7f   : > { %v401_v21 = vpop.permute.xlu0 %400 }
  0x80   : > { %v403_v23 = vsel %vm2384_vm3, %v399_v13, %v401_v21  ;;  %v404_v24 = vsel %vm2384_vm3, %v401_v21, %v399_v13  ;;  %vm1819_vm3 = vmand %vm529_vm15, %vm531_vm2 }
  0x81   : > { %vm406_vm4 = vcmp.eq.s32.totalorder %v404_v24, %v397_v19  ;;  %vm405_vm5 = vcmp.eq.s32.totalorder %v403_v23, %v394_v8  ;;  %v582_v19 = vadd.s32 1, %v1669_v14 }
  0x82   : > { %v451_v27 = vsel %vm406_vm4, 1, %v1525_v1  ;;  %v450_v33 = vsel %vm405_vm5, 1, %v1525_v1  ;;  %vm2380_vm4 = vcmp.lt.s32.totalorder %v1606_v2, 112 }
  0x83   : > { %v437_v18 = vpop.permute.xlu1 %436  ;;  %v459_v30 = vrot.slane %v451_v27, %v1664_v11  ;;  %v444_v31 = vpop.permute.xlu0 %443  ;;  %v455_v38 = vrot.slane %v450_v33, %v1664_v11  ;;  %vm584_vm2 = vcmp.ge.s32.totalorder %v582_v19, 0  ;;  %v1879_v33 = vsel %vm1819_vm3, 1.0, %v1526_v3 }
  0x85   : > { %vm1736_vm5 = vcmp.eq.s32.totalorder %v455_v38, 1  ;;  %vm1740_vm6 = vcmp.eq.s32.totalorder %v459_v30, 1 }
  0x87   : > { %v439_v28 = vpop.permute.xlu1 %438  ;;  %v479_v36 = vpop.permute.xlu0 %478 }
  0x88   : > { %v1746_v48 = vsel %vm2382_vm0, %v437_v18, %v439_v28  ;;  %v1750_v49 = vsel %vm2382_vm0, %v439_v28, %v437_v18  ;;  %vm1812_vm0 = vmand %vm528_vm8, %vm530_vm9  ;;  %v581_v18 = vadd.s32 1, %v1676_v16 }
  0x89   : > { %vm1840_vm9 = vmand %vm1812_vm0, %vm2385_vm14 }
  0x8a   : > { %vm583_vm15 = vcmp.ge.s32.totalorder %v581_v18, 0  ;;  %vm1860_vm14 = vmand %vm1812_vm0, %vm2388_vm7  ;;  %v1894_v38 = vsel %vm1840_vm9, 1.0, %v1526_v3  ;;  %vm2420_vm9 = vcmp.ge.s32.totalorder %v1692_v32, 0 }
  0x8b   : > { %v446_v34 = vpop.permute.xlu1 %445  ;;  %v486_v42 = vpop.permute.xlu0 %485 }
  0x8c   : > { %v1714_v40 = vsel %vm2383_vm12, %v444_v31, %v446_v34  ;;  %v1718_v41 = vsel %vm2383_vm12, %v446_v34, %v444_v31  ;;  %vm503_vm12 = vcmp.lt.s32.totalorder %v1796_v7, 16 }
  0x8d   : > { %v462_v50 = vsel %vm1736_vm5, %v1750_v49, %v1714_v40  ;;  %v463_v52 = vsel %vm1740_vm6, %v1746_v48, %v1718_v41  ;;  %vm1828_vm8 = vmand %vm1695_vm10, %vm503_vm12  ;;  %v621_v7 = vsel %vm1736_vm5, %v1714_v40, %v1750_v49 }
  0x8e   : > { %v465_v62 = vmul.f32 %v1727_v43, %v463_v52  ;;  %v464_v0 = vmul.f32 %v1761_v53, %v462_v50  ;;  %vm1848_vm10 = vmand %vm1819_vm3, %vm2386_vm11  ;;  %vm586_vm11 = vcmp.lt.s32.totalorder %v582_v19, 16  ;;  %v1886_v35 = vsel %vm1828_vm8, 1.0, %v1526_v3  ;;  %v625_v50 = vld [vmem:[%s2370_s1] sm:$0xff] }
  0x8f   : > { %v481_v39 = vpop.permute.xlu1 %480  ;;  %v511_v59 = vpop.permute.xlu0 %510  ;;  %v1915_v52 = vsel %vm1860_vm14, 1.0, %v1526_v3  ;;  %vm2416_vm14 = vcmp.lt.s32.totalorder %v1606_v2, 127 }
  0x90   : > { %v1770_v55 = vsel %vm2381_vm1, %v479_v36, %v481_v39  ;;  %v1774_v56 = vsel %vm2381_vm1, %v481_v39, %v479_v36  ;;  %vm2387_vm1 = vcmp.lt.s32.totalorder %v1606_v2, 113  ;;  %v1899_v39 = vsel %vm1848_vm10, 1.0, %v1526_v3 }
  0x93   : > { %v488_v51 = vpop.permute.xlu1 %487  ;;  %v518_v9 = vpop.permute.xlu0 %517 }
  0x94   : > { %v1778_v57 = vsel %vm2380_vm4, %v486_v42, %v488_v51  ;;  %v1782_v58 = vsel %vm2380_vm4, %v488_v51, %v486_v42  ;;  %vm1807_vm4 = vmand %vm1701_vm13, %vm2388_vm7  ;;  %vm514_vm13 = vcmp.lt.s32.totalorder %v1606_v2, 15  ;;  %vm585_vm7 = vcmp.lt.s32.totalorder %v581_v18, 16 }
  0x95   : > { %v492_v60 = vsel %vm1736_vm5, %v1774_v56, %v1778_v57  ;;  %v493_v61 = vsel %vm1740_vm6, %v1770_v55, %v1782_v58  ;;  %v1867_v30 = vsel %vm1807_vm4, 1.0, %v1526_v3  ;;  %vm546_vm4 = vcmp.lt.s32.totalorder %v1606_v2, 1  ;;  %vm1947_vm8 = vmand %vm583_vm15, %vm585_vm7 }
  0x96   : > { %v495_v63 = vmul.f32 %v1732_v44, %v493_v61  ;;  %v494_v1 = vmul.f32 %v1766_v54, %v492_v60  ;;  %v1904_v42 = vsel %vm1812_vm0, 1.0, %v1526_v3  ;;  %v568_v61 = vmul.f32 %v1879_v33, %v1627_v6  ;;  %vm589_vm10 = vmand %vm1947_vm8, %vm2420_vm9 }
  0x97   : > { %v513_v4 = vpop.permute.xlu1 %512  ;;  %v543_v16 = vpop.permute.xlu0 %542  ;;  %vm2413_vm0 = vcmp.ge.s32.totalorder %v1689_v29, 0  ;;  %v610_v32 = vsel %vm1740_vm6, %v1782_v58, %v1770_v55  ;;  %v1980_v28 = vsel %vm589_vm10, 1.0, %v1526_v3  ;;  %v1989_v55 = vsel %vm1947_vm8, 1.0, %v1526_v3 }
  0x98   : > { %v1411_v8 = vpack.c.bf16 %v495_v63, %v465_v62  ;;  %v1413_v10 = vpack.c.bf16 %v494_v1, %v464_v0  ;;  %v516_v25 = vsel %vm514_vm13, %v513_v4, %v511_v59  ;;  %v515_v34 = vsel %vm514_vm13, %v511_v59, %v513_v4 }
  0x99   : > { %vm2421_vm15 = vcmp.lt.s32.totalorder %v1734_v45, 16  ;;  %vm2428_vm9 = vcmp.lt.s32.totalorder %v1606_v2, 112 }
  0x9a   : > { %1412 = vmatprep.subr.bf16.mxu0 %v1411_v8  ;;  %vm2429_vm10 = vmmov %vm2428_vm9 }
  0x9b   : > { %1414 = vmatpush1.bf16.msra.mxu0 %v1413_v10  ;;  %v520_v20 = vpop.permute.xlu1 %519  ;;  %v550_v36 = vpop.permute.xlu0 %549  ;;  %v896_v10 = vld [vmem:[%s2374_s5 + $0x90] sm:$0xff] }
  0x9c   : > { %v1834_v14 = vsel %vm2387_vm1, %v518_v9, %v520_v20  ;;  %v523_v26 = vsel %vm2387_vm1, %v520_v20, %v518_v9  ;;  %vm572_vm1 = vmand %vm1819_vm3, %vm503_vm12 }
  0x9d   : > { %v524_v31 = vsel %vm1736_vm5, %v516_v25, %v1834_v14  ;;  %v525_v37 = vsel %vm1740_vm6, %v515_v34, %v523_v26  ;;  %vm1907_vm3 = vmand %vm584_vm2, %vm586_vm11  ;;  %v1918_v59 = vsel %vm572_vm1, 1.0, %v1526_v3  ;;  %v598_v21 = vsel %vm1740_vm6, %v523_v26, %v515_v34 }
  0x9e   : > { %v526_v51 = vmul.f32 %v1867_v30, %v524_v31  ;;  %vm1926_vm11 = vmand %vm1907_vm3, %vm2413_vm0  ;;  %v527_v29 = vmul.f32 %v1886_v35, %v525_v37  ;;  %v1970_v23 = vsel %vm1907_vm3, 1.0, %v1526_v3  ;;  %v597_v26 = vsel %vm1736_vm5, %v1834_v14, %v516_v25 }
  0x9f   : > { %v545_v27 = vpop.permute.xlu1 %544  ;;  %vm2417_vm1 = vmmov %vm2416_vm14  ;;  %v1963_v18 = vsel %vm1926_vm11, 1.0, %v1526_v3  ;;  %v612_v58 = vmul.f32 %v1970_v23, %v610_v32  ;;  %v599_v14 = vmul.f32 %v1980_v28, %v597_v26  ;;  %v622_v37 = vsel %vm1740_vm6, %v1718_v41, %v1746_v48  ;;  %v883_v26 = vld [vmem:[%s2374_s5 + $0x28] sm:$0xff] }
  0xa0   : > { %v547_v63 = vsel %vm546_vm4, %v543_v16, %v545_v27  ;;  %v548_v0 = vsel %vm546_vm4, %v545_v27, %v543_v16  ;;  %v567_v27 = vmul.f32 %v1904_v42, %v1621_v5  ;;  %v600_v31 = vmul.f32 %v1963_v18, %v598_v21  ;;  %vm616_vm7 = vmand %vm1907_vm3, %vm503_vm12  ;;  %v881_v21 = vld [vmem:[%s2374_s5 + $0x18] sm:$0xff] }
  0xa1   : > { %v609_v5 = vsel %vm1736_vm5, %v1778_v57, %v1774_v56  ;;  %v2007_v56 = vsel %vm616_vm7, 1.0, %v1526_v3  ;;  %vm615_vm12 = vmand %vm1947_vm8, %vm2421_vm15  ;;  %vm632_vm2 = vcmask 588800   ;;  %vm2422_vm3 = vcmp.lt.s32.totalorder %v1606_v2, 111 }
  0xa2   : > { %v624_v41 = vmul.f32 %v2007_v56, %v622_v37  ;;  %v2019_v48 = vsel %vm615_vm12, 1.0, %v1526_v3  ;;  %v903_v37 = vld [vmem:[%s2374_s5 + $0xc8] sm:$0xff]  ;;  %vm2423_vm0 = vmmov %vm2422_vm3  ;;  %vm2424_vm11 = vcmp.lt.s32.totalorder %v1606_v2, 17  ;;  %vm2430_vm7 = vcmp.lt.s32.totalorder %v1606_v2, 113 }
  0xa3   : > { %v552_v60 = vpop.permute.xlu1 %551  ;;  %v623_v45 = vmul.f32 %v2019_v48, %v621_v7  ;;  %v886_v7 = vld [vmem:[%s2374_s5 + $0x40] sm:$0xff]  ;;  %vm2431_vm15 = vmmov %vm2430_vm7  ;;  %vm2432_vm12 = vcmp.lt.s32.totalorder %v1606_v2, 127 }
  0xa4   : > { %v553_v1 = vsel %vm2416_vm14, %v550_v36, %v552_v60  ;;  %v554_v6 = vsel %vm2417_vm1, %v552_v60, %v550_v36  ;;  %v1423_v36 = vpack.c.bf16 %v612_v58, %v600_v31  ;;  %v900_v31 = vld [vmem:[%s2374_s5 + $0xb0] sm:$0xff]  ;;  %vm2425_vm14 = vmmov %vm2424_vm11  ;;  %vm2426_vm1 = vcmp.lt.s32.totalorder %v1606_v2, 16 }
  0xa5   : > { %v555_v4 = vsel %vm1736_vm5, %v548_v0, %v553_v1  ;;  %v556_v8 = vsel %vm1740_vm6, %v547_v63, %v554_v6  ;;  %v578_v9 = vsel %vm1740_vm6, %v554_v6, %v547_v63  ;;  %v577_v19 = vsel %vm1736_vm5, %v553_v1, %v548_v0  ;;  %v794_v1 = vld [vmem:[%s2373_s4] sm:$0xff]  ;;  %vm2427_vm8 = vmmov %vm2426_vm1 }
  0xa6   : > { %v557_v12 = vmul.f32 %v1894_v38, %v555_v4  ;;  %v558_v13 = vmul.f32 %v1899_v39, %v556_v8  ;;  %v580_v20 = vmul.f32 %v1918_v59, %v578_v9  ;;  %v579_v24 = vmul.f32 %v1915_v52, %v577_v19  ;;  %v894_v6 = vld [vmem:[%s2374_s5 + $0x80] sm:$0xff]  ;;  %v879_v9 = vld [vmem:[%s2374_s5 + $0x8] sm:$0xff] }
  0xa7   : > { %v878_v4 = vld [vmem:[%s2374_s5] sm:$0xff] }
  0xa8   : > { %v1415_v22 = vpack.c.bf16 %v558_v13, %v527_v29  ;;  %v1417_v16 = vpack.c.bf16 %v557_v12, %v526_v51  ;;  %v1419_v34 = vpack.c.bf16 %v580_v20, %v568_v61  ;;  %v1421_v25 = vpack.c.bf16 %v579_v24, %v567_v27  ;;  %v895_v29 = vld [vmem:[%s2374_s5 + $0x88] sm:$0xff]  ;;  %v897_v12 = vld [vmem:[%s2374_s5 + $0x98] sm:$0xff]  ;;  %v880_v20 = vld [vmem:[%s2374_s5 + $0x10] sm:$0xff] }
  0xa9   : > { %v611_v51 = vmul.f32 %v1989_v55, %v609_v5  ;;  %v1443_v8 = vpack.c.bf16 %v895_v29, %v894_v6  ;;  %v1445_v13 = vpack.c.bf16 %v879_v9, %v878_v4  ;;  %v1447_v19 = vpack.c.bf16 %v897_v12, %v896_v10  ;;  %v882_v27 = vld [vmem:[%s2374_s5 + $0x20] sm:$0xff] }
  0xaa   : > { %1416 = vmatprep.subr.bf16.mxu0 %v1415_v22  ;;  %v898_v22 = vld [vmem:[%s2374_s5 + $0xa0] sm:$0xff]  ;;  %v1449_v32 = vpack.c.bf16 %v881_v21, %v880_v20  ;;  %v1453_v5 = vpack.c.bf16 %v883_v26, %v882_v27 }
  0xab   : > { %1418 = vmatpush1.bf16.msra.mxu0 %v1417_v16  ;;  %v1425_v57 = vpack.c.bf16 %v611_v51, %v599_v14  ;;  %v899_v16 = vld [vmem:[%s2374_s5 + $0xa8] sm:$0xff]  ;;  %v884_v14 = vld [vmem:[%s2374_s5 + $0x30] sm:$0xff] }
  0xac   : > { %1420 = vmatprep.subr.bf16.mxu0 %v1419_v34  ;;  %v630_v60 = vpop.permute.xlu0 %629  ;;  %v1451_v24 = vpack.c.bf16 %v899_v16, %v898_v22  ;;  %v901_v34 = vld [vmem:[%s2374_s5 + $0xb8] sm:$0xff] }
  0xad   : > { %v1455_v58 = vpack.c.bf16 %v901_v34, %v900_v31 }
  0xaf   : > { %1422 = vmatpush1.bf16.msra.mxu0 %v1421_v25  ;;  %v885_v25 = vld [vmem:[%s2374_s5 + $0x38] sm:$0xff] }
  0xb0   : > { %1424 = vmatprep.subr.bf16.mxu0 %v1423_v36  ;;  %v902_v36 = vld [vmem:[%s2374_s5 + $0xc0] sm:$0xff]  ;;  %v1457_v51 = vpack.c.bf16 %v885_v25, %v884_v14 }
  0xb3   : > { %1426 = vmatpush1.bf16.msra.mxu0 %v1425_v57  ;;  %v1459_v57 = vpack.c.bf16 %v903_v37, %v902_v36 }
  0xb4   : > { %652 = vmatprep.subr.mxu0 %v624_v41  ;;  %v887_v41 = vld [vmem:[%s2374_s5 + $0x48] sm:$0xff] }
  0xb7   : > { %653 = vmatpush1.msra.mxu0 %v623_v45  ;;  %v904_v45 = vld [vmem:[%s2374_s5 + $0xd0] sm:$0xff] }
  0xb8   : > { %1325 = vmatmul.mubr.msk.f32.vlgmr.msra.gmra.mrb[0].mxu0 %vm632_vm2, %v625_v50  ;;  %1444 = vmatprep.subr.bf16.mxu0 %v1443_v8  ;;  %v905_v50 = vld [vmem:[%s2374_s5 + $0xd8] sm:$0xff] }
  0xb9   : > { %1446 = vmatpush3.bf16.msra.mxu0 %v1445_v13 }
  0xba   : > { %1448 = vmatprep.subr.bf16.mxu0 %v1447_v19 }
  0xbd   : > { %1450 = vmatpush3.bf16.msra.mxu0 %v1449_v32 }
  0xbe   : > { %1452 = vmatprep.subr.bf16.mxu0 %v1451_v24 }
  0xc1   : > { %1454 = vmatpush3.bf16.msra.mxu0 %v1453_v5 }
  0xc2   : > { %1456 = vmatprep.subr.bf16.mxu0 %v1455_v58 }
  0xc5   : > { %1458 = vmatpush3.bf16.msra.mxu0 %v1457_v51 }
  0xc6   : > { %1460 = vmatprep.subr.bf16.mxu0 %v1459_v57 }
 0x18b   : > { %v702_v61 = vpop.f32.mrb[0].mxu0 }
 0x18c   : > { %v703_v40 = vadd.f32 %v702_v61, %v630_v60  ;;  %v704_v49 = vpop.f32.mrb[1].mxu0  ;;  %v1463_v61 = vpack.c.bf16 %v905_v50, %v904_v45 }
 0x18d   : > { %v705_v62 = vadd.f32 %v704_v49, %v630_v60  ;;  %v1461_v60 = vpack.c.bf16 %v887_v41, %v886_v7  ;;  %v889_v49 = vld [vmem:[%s2374_s5 + $0x58] sm:$0xff] }
 0x18e   : > { %v2030_v63 = vmax.f32 %v703_v40, 0.0  ;;  %v888_v40 = vld [vmem:[%s2374_s5 + $0x50] sm:$0xff] }
 0x18f   : > { %v2032_v0 = vmax.f32 %v705_v62, 0.0  ;;  %v906_v62 = vld [vmem:[%s2374_s5 + $0xe0] sm:$0xff]  ;;  %1462 = vmatpush3.bf16.msra.mxu0 %v1461_v60  ;;  %v1465_v6 = vpack.c.bf16 %v889_v49, %v888_v40 }
 0x190   : > { %709 = vst [vmem:[%s374_s14] sm:$0xff] %v2030_v63  ;;  %717 = vrot.lane.b32.xlu0 %v2030_v63, %s1529_s21  ;;  %711 = vrot.lane.b32.xlu1 %v2030_v63, %s1528_s20 }
 0x191   : > { %710 = vst [vmem:[%s374_s14 + $0x8] sm:$0xff] %v2032_v0  ;;  %1464 = vmatprep.subr.bf16.mxu0 %v1463_v61 }
 0x193   : > { %1466 = vmatpush3.bf16.msra.mxu0 %v1465_v6 }
 0x194   : > { %727 = vrot.lane.b32.xlu0 %v2030_v63, %s1530_s22  ;;  %713 = vrot.lane.b32.xlu1 %v2032_v0, %s1528_s20 }
 0x198   : > { %733 = vrot.lane.b32.xlu0 %v2030_v63, %s1531_s23  ;;  %719 = vrot.lane.b32.xlu1 %v2032_v0, %s1529_s21 }
 0x19c   : > { %743 = vrot.lane.b32.xlu0 %v2030_v63, %s1532_s24  ;;  %729 = vrot.lane.b32.xlu1 %v2032_v0, %s1530_s22  ;;  %s384_s22 = scalar_lea.vmem %s2379_s10, %s1612_s16 }
 0x1a0   : > { %749 = vrot.lane.b32.xlu0 %v2030_v63, %s1533_s25  ;;  %735 = vrot.lane.b32.xlu1 %v2032_v0, %s1531_s23  ;;  %s379_s23 = scalar_lea.vmem %s2378_s9, %s1612_s16 }
 0x1a4   : > { %759 = vrot.lane.b32.xlu0 %v2030_v63, %s1534_s26  ;;  %745 = vrot.lane.b32.xlu1 %v2032_v0, %s1532_s24  ;;  %s1535_s24 = smov 119  }
 0x1a8   : > { %765 = vrot.lane.b32.xlu0 %v2030_v63, %s1527_s15  ;;  %751 = vrot.lane.b32.xlu1 %v2032_v0, %s1533_s25  ;;  %s1536_s25 = smov 9  }
 0x1ac   : > { %797 = vperm.xlu0 %1515, %v794_v1   ;;  %761 = vrot.lane.b32.xlu1 %v2032_v0, %s1534_s26  ;;  %v907_v1 = vld [vmem:[%s2374_s5 + $0xe8] sm:$0xff] }
 0x1ad   : > { %v1467_v29 = vpack.c.bf16 %v907_v1, %v906_v62 }
 0x1af   : > { %1468 = vmatprep.subr.bf16.mxu0 %v1467_v29 }
 0x1b0   : > { %767 = vrot.lane.b32.xlu1 %v2032_v0, %s1527_s15 }
 0x202   : > { %v718_v4 = vpop.permute.xlu0 %717  ;;  %v712_v8 = vpop.permute.xlu1 %711 }
 0x206   : > { %v728_v9 = vpop.permute.xlu0 %727  ;;  %v714_v10 = vpop.permute.xlu1 %713 }
 0x207   : > { %v2159_v16 = vsel %vm2424_vm11, %v712_v8, %v714_v10  ;;  %v2163_v32 = vsel %vm2425_vm14, %v714_v10, %v712_v8  ;;  %vm2309_vm11 = vcmp.eq.s32.totalorder %v999_v17, 1 }
 0x20a   : > { %v734_v12 = vpop.permute.xlu0 %733  ;;  %v720_v13 = vpop.permute.xlu1 %719 }
 0x20b   : > { %v2151_v20 = vsel %vm2422_vm3, %v718_v4, %v720_v13  ;;  %v2155_v21 = vsel %vm2423_vm0, %v720_v13, %v718_v4  ;;  %vm2433_vm3 = vmmov %vm2432_vm12 }
 0x20c   : > { %v723_v24 = vsel %vm1736_vm5, %v2163_v32, %v2151_v20  ;;  %v724_v26 = vsel %vm1740_vm6, %v2159_v16, %v2155_v21 }
 0x20d   : > { %v726_v36 = vmul.f32 %v1727_v43, %v724_v26  ;;  %v725_v51 = vmul.f32 %v1761_v53, %v723_v24 }
 0x20e   : > { %v730_v19 = vpop.permute.xlu1 %729  ;;  %v744_v22 = vpop.permute.xlu0 %743 }
 0x20f   : > { %v731_v31 = vsel %vm2426_vm1, %v728_v9, %v730_v19  ;;  %v732_v34 = vsel %vm2427_vm8, %v730_v19, %v728_v9 }
 0x212   : > { %v736_v27 = vpop.permute.xlu1 %735  ;;  %v750_v7 = vpop.permute.xlu0 %749 }
 0x213   : > { %v737_v5 = vsel %vm2428_vm9, %v734_v12, %v736_v27  ;;  %v738_v58 = vsel %vm2429_vm10, %v736_v27, %v734_v12 }
 0x214   : > { %v739_v14 = vsel %vm1736_vm5, %v732_v34, %v737_v5  ;;  %v740_v25 = vsel %vm1740_vm6, %v731_v31, %v738_v58 }
 0x215   : > { %v742_v37 = vmul.f32 %v1732_v44, %v740_v25  ;;  %v741_v57 = vmul.f32 %v1766_v54, %v739_v14 }
 0x216   : > { %v746_v41 = vpop.permute.xlu1 %745  ;;  %v760_v61 = vpop.permute.xlu0 %759 }
 0x217   : > { %v1427_v45 = vpack.c.bf16 %v742_v37, %v726_v36  ;;  %v1429_v50 = vpack.c.bf16 %v741_v57, %v725_v51  ;;  %v748_v43 = vsel %vm514_vm13, %v746_v41, %v744_v22  ;;  %v747_v49 = vsel %vm514_vm13, %v744_v22, %v746_v41 }
 0x218   : > { %v776_v36 = vmul.f32 %v1879_v33, %v2032_v0  ;;  %v786_v37 = vsel %vm1740_vm6, %v738_v58, %v731_v31  ;;  %v775_v57 = vmul.f32 %v1904_v42, %v2030_v63 }
 0x219   : > { %1428 = vmatprep.subr.bf16.mxu1 %v1427_v45  ;;  %v788_v33 = vmul.f32 %v1970_v23, %v786_v37  ;;  %v789_v23 = vsel %vm1736_vm5, %v2151_v20, %v2163_v32  ;;  %v909_v20 = vld [vmem:[%s2374_s5 + $0xf8] sm:$0xff] }
 0x21a   : > { %1430 = vmatpush1.bf16.msra.mxu1 %v1429_v50  ;;  %v752_v60 = vpop.permute.xlu1 %751  ;;  %v766_v1 = vpop.permute.xlu0 %765  ;;  %v893_v32 = vld [vmem:[%s2374_s5 + $0x78] sm:$0xff] }
 0x21b   : > { %v753_v40 = vsel %vm2430_vm7, %v750_v7, %v752_v60  ;;  %v754_v44 = vsel %vm2431_vm15, %v752_v60, %v750_v7  ;;  %v785_v7 = vsel %vm1736_vm5, %v737_v5, %v732_v34 }
 0x21c   : > { %v755_v54 = vsel %vm1736_vm5, %v748_v43, %v753_v40  ;;  %v756_v62 = vsel %vm1740_vm6, %v747_v49, %v754_v44  ;;  %v787_v58 = vmul.f32 %v1989_v55, %v785_v7  ;;  %v890_v55 = vld [vmem:[%s2374_s5 + $0x60] sm:$0xff] }
 0x21d   : > { %v757_v6 = vmul.f32 %v1867_v30, %v755_v54  ;;  %v758_v12 = vmul.f32 %v1886_v35, %v756_v62  ;;  %v782_v35 = vsel %vm1740_vm6, %v754_v44, %v747_v49  ;;  %v1077_v54 = vld [vmem:[%s2376_s7 + $0x8] sm:$0xff]  ;;  %v1074_v49 = vld [vmem:[%s2375_s6] sm:$0xff] }
 0x21e   : > { %v762_v53 = vpop.permute.xlu1 %761  ;;  %v784_v51 = vmul.f32 %v1963_v18, %v782_v35  ;;  %v790_v18 = vsel %vm1740_vm6, %v2155_v21, %v2159_v16  ;;  %v892_v16 = vld [vmem:[%s2374_s5 + $0x70] sm:$0xff]  ;;  %v1076_v62 = vld [vmem:[%s2376_s7] sm:$0xff] }
 0x21f   : > { %v763_v4 = vsel %vm546_vm4, %v760_v61, %v762_v53  ;;  %v764_v8 = vsel %vm546_vm4, %v762_v53, %v760_v61  ;;  %v792_v63 = vmul.f32 %v2007_v56, %v790_v18  ;;  %v1469_v56 = vpack.c.bf16 %v891_v46, %v890_v55 }
 0x220   : > { %v1439_v31 = vpack.c.bf16 %v788_v33, %v784_v51  ;;  %v1473_v34 = vpack.c.bf16 %v893_v32, %v892_v16  ;;  %v1075_v16 = vld [vmem:[%s2375_s6 + $0x8] sm:$0xff] }
 0x221   : > { %1470 = vmatpush3.bf16.msra.mxu0 %v1469_v56 }
 0x222   : > { %v768_v29 = vpop.permute.xlu1 %767 }
 0x223   : > { %v769_v9 = vsel %vm2432_vm12, %v766_v1, %v768_v29  ;;  %v770_v10 = vsel %vm2433_vm3, %v768_v29, %v766_v1  ;;  %v407_v1 = vshra.s32 %v1606_v2, 3 }
 0x224   : > { %v771_v13 = vsel %vm1736_vm5, %v764_v8, %v769_v9  ;;  %v772_v30 = vsel %vm1740_vm6, %v763_v4, %v770_v10  ;;  %v778_v19 = vsel %vm1740_vm6, %v770_v10, %v763_v4  ;;  %v777_v27 = vsel %vm1736_vm5, %v769_v9, %v764_v8 }
 0x225   : > { %v773_v22 = vmul.f32 %v1894_v38, %v771_v13  ;;  %v774_v24 = vmul.f32 %v1899_v39, %v772_v30  ;;  %v780_v26 = vmul.f32 %v1918_v59, %v778_v19  ;;  %v779_v38 = vmul.f32 %v1915_v52, %v777_v27 }
 0x226   : > { %v781_v39 = vsel %vm1736_vm5, %v753_v40, %v748_v43  ;;  %v980_v29 = vadd.s32 4294967295, %v407_v1  ;;  %vm1028_vm14 = vcmp.ge.s32.totalorder %v407_v1, 0  ;;  %vm1029_vm1 = vcmp.lt.s32.totalorder %v407_v1, 8 }
 0x227   : > { %v1431_v14 = vpack.c.bf16 %v774_v24, %v758_v12  ;;  %v1433_v25 = vpack.c.bf16 %v773_v22, %v757_v6  ;;  %v1435_v59 = vpack.c.bf16 %v780_v26, %v776_v36  ;;  %v783_v0 = vmul.f32 %v1980_v28, %v781_v39  ;;  %vm1030_vm9 = vmand %vm1028_vm14, %vm1029_vm1 }
 0x228   : > { %v1437_v52 = vpack.c.bf16 %v779_v38, %v775_v57  ;;  %v791_v28 = vmul.f32 %v2019_v48, %v789_v23  ;;  %v908_v48 = vld [vmem:[%s2374_s5 + $0xf0] sm:$0xff]  ;;  %v408_v6 = vand.u32 7, %v1606_v2  ;;  %vm981_vm5 = vcmp.ge.s32.totalorder %v980_v29, 0 }
 0x229   : > { %1432 = vmatprep.subr.bf16.mxu1 %v1431_v14  ;;  %v1441_v42 = vpack.c.bf16 %v787_v58, %v783_v0  ;;  %v1471_v21 = vpack.c.bf16 %v909_v20, %v908_v48  ;;  %vm982_vm6 = vcmp.lt.s32.totalorder %v980_v29, 8  ;;  %v1052_v22 = vadd.s32 1, %v407_v1 }
 0x22a   : > { %1434 = vmatpush1.bf16.msra.mxu1 %v1433_v25  ;;  %v984_v4 = vadd.s32 4294967295, %v408_v6  ;;  %vm2299_vm13 = vmand %vm981_vm5, %vm982_vm6  ;;  %v1015_v12 = vadd.s32 1, %v408_v6  ;;  %v1331_v25 = vsel %vm1030_vm9, 1.0, %v1526_v3 }
 0x22b   : > { %1436 = vmatprep.subr.bf16.mxu1 %v1435_v59  ;;  %1472 = vmatprep.subr.bf16.mxu0 %v1471_v21  ;;  %v798_v5 = vpop.permute.xlu0 %797  ;;  %v1328_v19 = vsel %vm2299_vm13, 1.0, %v1526_v3  ;;  %vm1053_vm15 = vcmp.ge.s32.totalorder %v1052_v22, 0  ;;  %vm1054_vm12 = vcmp.lt.s32.totalorder %v1052_v22, 8 }
 0x22c   : > { %1474 = vmatpush3.bf16.msra.mxu0 %v1473_v34  ;;  %vm985_vm4 = vcmp.ge.s32.totalorder %v984_v4, 0  ;;  %vm1018_vm8 = vcmp.lt.s32.totalorder %v1015_v12, 8  ;;  %vm2327_vm5 = vmand %vm1053_vm15, %vm1054_vm12 }
 0x22d   : > { %vm986_vm0 = vmand %vm2299_vm13, %vm985_vm4 }
 0x22e   : > { %1438 = vmatpush1.bf16.msra.mxu1 %v1437_v52  ;;  %v1327_v13 = vsel %vm986_vm0, 1.0, %v1526_v3  ;;  %vm1019_vm10 = vmand %vm2299_vm13, %vm1018_vm8 }
 0x22f   : > { %1440 = vmatprep.subr.bf16.mxu1 %v1439_v31  ;;  %vm1031_vm7 = vmand %vm1030_vm9, %vm985_vm4  ;;  %v1329_v37 = vsel %vm1019_vm10, 1.0, %v1526_v3 }
 0x230   : > { %vm1047_vm3 = vmand %vm1030_vm9, %vm1018_vm8  ;;  %v1330_v39 = vsel %vm1031_vm7, 1.0, %v1526_v3 }
 0x231   : > { %v1332_v51 = vsel %vm1047_vm3, 1.0, %v1526_v3  ;;  %vm1056_vm6 = vmand %vm2327_vm5, %vm985_vm4 }
 0x232   : > { %1442 = vmatpush1.bf16.msra.mxu1 %v1441_v42  ;;  %v1333_v58 = vsel %vm1056_vm6, 1.0, %v1526_v3  ;;  %vm1069_vm13 = vmand %vm2327_vm5, %vm1018_vm8 }
 0x233   : > { %819 = vmatprep.subr.mxu1 %v792_v63  ;;  %v1335_v48 = vsel %vm1069_vm13, 1.0, %v1526_v3 }
 0x236   : > { %820 = vmatpush1.msra.mxu1 %v791_v28  ;;  %v1334_v28 = vsel %vm2327_vm5, 1.0, %v1526_v3 }
 0x237   : > { %1326 = vmatmul.mubr.msk.f32.vlgmr.msra.gmra.mrb[0].mxu1 %vm632_vm2, %v793_v47 }
 0x238   : > { %1408 = vmatprep.mubr.msk.f32.mxu1 %vm632_vm2, %v1074_v49 }
 0x30a   : > { %v869_v41 = vpop.f32.mrb[0].mxu1 }
 0x30b   : > { %v870_v45 = vadd.f32 %v869_v41, %v798_v5  ;;  %v871_v50 = vpop.f32.mrb[1].mxu1 }
 0x30c   : > { %v872_v60 = vadd.f32 %v871_v50, %v798_v5 }
 0x30d   : > { %v874_v61 = vmax.f32 %v870_v45, 0.0 }
 0x30e   : > { %v875_v40 = vmax.f32 %v872_v60, 0.0 }
 0x30f   : > { %876 = vst [vmem:[%s379_s23] sm:$0xff] %v874_v61 }
 0x310   : > { %877 = vst [vmem:[%s379_s23 + $0x8] sm:$0xff] %v875_v40  ;;  %974 = vmatprep.mubr.f32.mxu0 %v875_v40 }
 0x311   : > { %975 = vmatmul.mubr.f32.vlgmr.msra.gmra.mrb[2].mxu0 %v874_v61 }
 0x3e4   : > { %v1376_v43 = vpop.f32.mrb[2].mxu0 }
 0x3e5   : > { %v1377_v44 = vpop.f32.mrb[3].mxu0 }
 0x3e6   : > { %v2275_v53 = vadd.f32 %v1377_v44, %v1376_v43 }
 0x3e8   : > { %993 = vrot.lane.b32.xlu0 %v2275_v53, %s1535_s24  ;;  %991 = vrot.lane.b32.xlu1 %v2275_v53, %s1536_s25  ;;  %v1045_v18 = vmul.f32 %v2275_v53, %v1331_v25 }
 0x3ec   : > { %1011 = vrot.lane.b32.xlu0 %v2275_v53, %s1537_s27  ;;  %1009 = vrot.lane.b32.xlu1 %v2275_v53, %s1538_s28 }
 0x3f0   : > { %1024 = vrot.lane.b32.xlu0 %v2275_v53, %s1539_s29  ;;  %1022 = vrot.lane.b32.xlu1 %v2275_v53, %s1540_s30 }
 0x3f4   : > { %1037 = vrot.lane.b32.xlu0 %v2275_v53, %s1527_s15  ;;  %1035 = vrot.lane.b32.xlu1 %v2275_v53, %s1534_s26 }
 0x3f8   : > { %1085 = vperm.xlu0 %1515, %v1077_v54   ;;  %1080 = vperm.xlu1 %1516, %v1076_v62  }
 0x45a   : > { %v994_v9 = vpop.permute.xlu0 %993  ;;  %v992_v10 = vpop.permute.xlu1 %991 }
 0x45b   : > { %v1001_v30 = vsel %vm2309_vm11, %v992_v10, %v994_v9  ;;  %v1072_v20 = vsel %vm2309_vm11, %v994_v9, %v992_v10 }
 0x45c   : > { %v1002_v15 = vmul.f32 %v1327_v13, %v1001_v30  ;;  %v1073_v21 = vmul.f32 %v1335_v48, %v1072_v20 }
 0x45e   : > { %v1012_v24 = vpop.permute.xlu0 %1011  ;;  %v1010_v27 = vpop.permute.xlu1 %1009 }
 0x45f   : > { %v1013_v11 = vsel %vm2309_vm11, %v1010_v27, %v1012_v24  ;;  %v1066_v47 = vsel %vm2309_vm11, %v1012_v24, %v1010_v27 }
 0x460   : > { %v1014_v17 = vmul.f32 %v1328_v19, %v1013_v11  ;;  %v1067_v46 = vmul.f32 %v1334_v28, %v1066_v47 }
 0x462   : > { %v1025_v26 = vpop.permute.xlu0 %1024  ;;  %v1023_v35 = vpop.permute.xlu1 %1022  ;;  %v1475_v14 = vpack.c.bf16 %v1014_v17, %v1002_v15 }
 0x463   : > { %v1026_v38 = vsel %vm2309_vm11, %v1023_v35, %v1025_v26  ;;  %v1060_v42 = vsel %vm2309_vm11, %v1025_v26, %v1023_v35 }
 0x464   : > { %1476 = vmatprep.subr.bf16.mxu1 %v1475_v14  ;;  %v1027_v0 = vmul.f32 %v1329_v37, %v1026_v38  ;;  %v1061_v55 = vmul.f32 %v1333_v58, %v1060_v42 }
 0x465   : > { %1478 = vmatpush3.bf16.msra.mxu1 %v1475_v14 }
 0x466   : > { %v1038_v59 = vpop.permute.xlu0 %1037  ;;  %v1036_v57 = vpop.permute.xlu1 %1035  ;;  %v1487_v56 = vpack.c.bf16 %v1067_v46, %v1061_v55 }
 0x467   : > { %v1039_v7 = vsel %vm2309_vm11, %v1036_v57, %v1038_v59  ;;  %v1050_v33 = vsel %vm2309_vm11, %v1038_v59, %v1036_v57 }
 0x468   : > { %v1040_v52 = vmul.f32 %v1330_v39, %v1039_v7  ;;  %v1051_v31 = vmul.f32 %v1332_v51, %v1050_v33 }
 0x46a   : > { %v1479_v23 = vpack.c.bf16 %v1040_v52, %v1027_v0  ;;  %v1483_v63 = vpack.c.bf16 %v1051_v31, %v1045_v18 }
 0x46c   : > { %1480 = vmatprep.subr.bf16.mxu1 %v1479_v23 }
 0x46d   : > { %1482 = vmatpush3.bf16.msra.mxu1 %v1479_v23 }
 0x46e   : > { %1484 = vmatprep.subr.bf16.mxu1 %v1483_v63 }
 0x471   : > { %1486 = vmatpush3.bf16.msra.mxu1 %v1483_v63 }
 0x472   : > { %1488 = vmatprep.subr.bf16.mxu1 %v1487_v56 }
 0x475   : > { %1490 = vmatpush3.bf16.msra.mxu1 %v1487_v56 }
 0x476   : > { %1406 = vmatprep.subr.mxu1 %v1073_v21 }
 0x477   : > { %v1081_v32 = vpop.permute.xlu1 %1080  ;;  %v1086_v34 = vpop.permute.xlu0 %1085 }
 0x479   : > { %1407 = vmatpush3.msra.mxu1 %v1073_v21 }
 0x47a   : > { %1409 = vmatmul.mubr.msk.f32.vlgmr.msra.gmra.mrb[2].mxu1 %vm632_vm2, %v1075_v16 }
 0x54d   : > { %v1410_v5 = vpop.f32.mrb[2].mxu1 }
 0x54e   : > { %v1166_v41 = vadd.f32 %v1410_v5, %v1086_v34  ;;  %v1160_v3 = vpop.f32.mrb[3].mxu1 }
 0x54f   : > { %v1161_v45 = vadd.f32 %v1160_v3, %v1081_v32 }
 0x550   : > { %v1170_v50 = vmax.f32 %v1166_v41, 0.0 }
 0x551   : > { %v1169_v60 = vmax.f32 %v1161_v45, 0.0 }
 0x552   : > { %1172 = vst [vmem:[%s384_s22 + $0x8] sm:$0xff] %v1170_v50 }
 0x553   : > { %1171 = vst [vmem:[%s384_s22] sm:$0xff] %v1169_v60 }
 0x554 PF: > { %s21_s13 = sadd.s32 1, %s1523_s13  }
 0x555   : > { %p18_p4 = scmp.ge.s32.totalorder %s21_s13, 4  }
 0x557   :  { %20 = sbr.rel (!%p18_p4) target bundleno = 1 (0x1), region = 106 }

</bundles_post_ra>
